<compile_context>
chip_gen: v6e
topology: v6e:2x2x1
jax: 0.10.0
libtpu: 0.0.40
codegen_flags: <defaults>
</compile_context>

<pallas_src>
import functools
import math

import jax
import jax.numpy as jnp
from jax import lax
from jax.experimental import pallas as pl
from jax.experimental.pallas import tpu as pltpu


# ----------------------------------------------------------------------------
# helpers
# ----------------------------------------------------------------------------
def _layer_norm(x, gamma, beta, eps=1e-12):
    mu = jnp.mean(x, axis=-1, keepdims=True)
    var = jnp.mean((x - mu) ** 2, axis=-1, keepdims=True)
    return (x - mu) * lax.rsqrt(var + eps) * gamma + beta


# ----------------------------------------------------------------------------
# fused Pallas kernel: all encoder layers + pooler + classifier head
# ----------------------------------------------------------------------------
def fused_bert_kernel(
    x_ref, maskb_ref,
    wqkv_ref, bqkv_ref, wo_ref, bo_ref, ln1g_ref, ln1b_ref,
    w1_ref, b1_ref, w2_ref, b2_ref, ln2g_ref, ln2b_ref,
    pw_ref, pb_ref, cw_ref, cb_ref,
    out_ref,
    x_sc,
    *, num_heads):
    l = pl.program_id(1)
    num_layers = pl.num_programs(1)

    Bblk, S, H = x_ref.shape
    M = Bblk * S
    hd = H // num_heads

    # Layer 0: bring this batch chunk's embedded sequences into the resident
    # VMEM scratch; they stay there across all layer steps.
    @pl.when(l == 0)
    def _():
        x_sc[...] = x_ref[...].reshape(M, H)

    x = x_sc[...]                                  # (M, H) f32 resident
    xb = x.astype(jnp.bfloat16)

    # Fused QKV projection: one lane-dense (M,H)x(H,3H) MXU matmul, f32 acc.
    # The 1/sqrt(hd) attention scale is folded into the Q slice on the host.
    qkv = jnp.dot(xb, wqkv_ref[0],
                  preferred_element_type=jnp.float32) + bqkv_ref[0]   # (M, 3H)
    qkv = qkv.reshape(Bblk, S, 3 * H).astype(jnp.bfloat16)

    mask_b = maskb_ref[...]                        # (Bblk, 1, S) additive key bias

    # Per-head attention (inherently per-head small matmuls), batched over the
    # folded batch rows.  Softmax in f32, normalization via EUP reciprocal.
    # TODO(synk): for small S the softmax/QK^T lane density is still low; a
    # batch-dense (block-diagonal) score layout or flash-style KV tiling would
    # improve it at real scale.
    ctx_heads = []
    for n in range(num_heads):
        qn = qkv[:, :, n * hd:(n + 1) * hd]
        kn = qkv[:, :, H + n * hd:H + (n + 1) * hd]
        vn = qkv[:, :, 2 * H + n * hd:2 * H + (n + 1) * hd]
        s = jnp.einsum('bqd,bkd->bqk', qn, kn,
                       preferred_element_type=jnp.float32)            # (Bblk,S,S)
        s = s + mask_b
        m = jnp.max(s, axis=-1, keepdims=True)
        e = jnp.exp(s - m)
        p = e * pl.reciprocal(jnp.sum(e, axis=-1, keepdims=True), approx=True)
        ctx_heads.append(
            jnp.einsum('bqk,bkd->bqd', p.astype(jnp.bfloat16), vn,
                       preferred_element_type=jnp.float32))           # (Bblk,S,hd)

    # Heads back into lanes -> single output-projection matmul; the head
    # contraction (K = NH*hd = H) happens inside the MXU f32 accumulator.
    ctx = jnp.concatenate(ctx_heads, axis=-1).reshape(M, H)
    attn = jnp.dot(ctx.astype(jnp.bfloat16), wo_ref[0],
                   preferred_element_type=jnp.float32) + bo_ref[0]    # (M, H)

    h1 = _layer_norm(x + attn, ln1g_ref[0], ln1b_ref[0])

    # Feed-forward (GELU) — bf16 MXU operands, f32 elementwise math.
    ffn = jnp.dot(h1.astype(jnp.bfloat16), w1_ref[0],
                  preferred_element_type=jnp.float32) + b1_ref[0]
    ffn = jax.nn.gelu(ffn)
    ffn = jnp.dot(ffn.astype(jnp.bfloat16), w2_ref[0],
                  preferred_element_type=jnp.float32) + b2_ref[0]
    out = _layer_norm(h1 + ffn, ln2g_ref[0], ln2b_ref[0])

    x_sc[...] = out

    # Final layer: fused BERT pooler (tanh on [CLS]) + dropout(eval)=identity
    # + Linear + ReLU classifier head.  Output written once per batch chunk.
    @pl.when(l == num_layers - 1)
    def _():
        cls_tok = out.reshape(Bblk, S, H)[:, 0, :].astype(jnp.bfloat16)  # (Bblk,H)
        pooled = jnp.tanh(
            jnp.dot(cls_tok, pw_ref[...],
                    preferred_element_type=jnp.float32) + pb_ref[...])
        # TODO(synk): training-mode dropout would draw pltpu.prng_random_bits here.
        logits = jnp.dot(pooled.astype(jnp.bfloat16), cw_ref[...],
                         preferred_element_type=jnp.float32) + cb_ref[...]
        out_ref[0] = jnp.maximum(logits, 0.0).astype(out_ref.dtype)


# ----------------------------------------------------------------------------
# one-time host-side weight preparation (hoisted out of the per-call forward)
# ----------------------------------------------------------------------------
def prepare_weights(params, *, num_heads):
    layers = params["layers"]
    H = layers[0]["wq"].shape[0]
    I = layers[0]["w1"].shape[1]
    hd = H // num_heads
    scale = 1.0 / math.sqrt(hd)
    n_cats = params["cls_w"].shape[1]
    Cp = ((n_cats + 127) // 128) * 128          # lane-dense classifier output

    def stack(fn, name, dtype):
        return jnp.stack([fn(lp[name]) for lp in layers]).astype(dtype)

    # Fused QKV weights/biases: (L, H, 3H) / (L, 1, 3H); scale folded into Q.
    wqkv = jnp.stack([jnp.concatenate([lp["wq"] * scale, lp["wk"], lp["wv"]],
                                      axis=1) for lp in layers]).astype(jnp.bfloat16)
    bqkv = jnp.stack([jnp.concatenate([lp["bq"] * scale, lp["bk"], lp["bv"]]
                                      ).reshape(1, 3 * H)
                      for lp in layers]).astype(jnp.float32)

    wo = stack(lambda w: w, "wo", jnp.bfloat16)
    bo = stack(lambda b: b.reshape(1, H), "bo", jnp.float32)
    ln1g = stack(lambda g: g.reshape(1, H), "ln1_g", jnp.float32)
    ln1b = stack(lambda g: g.reshape(1, H), "ln1_b", jnp.float32)
    w1 = stack(lambda w: w, "w1", jnp.bfloat16)
    b1 = stack(lambda b: b.reshape(1, I), "b1", jnp.float32)
    w2 = stack(lambda w: w, "w2", jnp.bfloat16)
    b2 = stack(lambda b: b.reshape(1, H), "b2", jnp.float32)
    ln2g = stack(lambda g: g.reshape(1, H), "ln2_g", jnp.float32)
    ln2b = stack(lambda g: g.reshape(1, H), "ln2_b", jnp.float32)

    pw = params["pooler_w"].astype(jnp.bfloat16)
    pb = params["pooler_b"].reshape(1, H).astype(jnp.float32)
    cw = jnp.zeros((H, Cp), jnp.bfloat16).at[:, :n_cats].set(
        params["cls_w"].astype(jnp.bfloat16))
    cb = jnp.zeros((1, Cp), jnp.float32).at[0, :n_cats].set(params["cls_b"])

    return {
        "layer_args": [wqkv, bqkv, wo, bo, ln1g, ln1b, w1, b1, w2, b2, ln2g, ln2b],
        "head_args": [pw, pb, cw, cb],
        "word_emb": params["word_emb"],
        "pos_emb": params["pos_emb"],
        "emb_ln_g": params["emb_ln_g"],
        "emb_ln_b": params["emb_ln_b"],
    }


# ----------------------------------------------------------------------------
# pallas_call wrapper (jitted per call; weight prep is NOT redone here)
# ----------------------------------------------------------------------------
def bert_classifier_forward(prep, input_ids, mask, *, num_heads, batch_block,
                            n_cats):
    B, S = input_ids.shape
    H = prep["word_emb"].shape[1]
    Cp = prep["head_args"][2].shape[1]
    L = prep["layer_args"][0].shape[0]

    Bblk = batch_block
    Bchunks = (B + Bblk - 1) // Bblk
    Bpad = Bchunks * Bblk

    # Plain-JAX glue: embedding gather + embedding LayerNorm + additive mask bias.
    # TODO(synk): the embedding gather could move in-kernel via a scalar-prefetch
    # DMA gather; kept as JAX glue here.
    emb = prep["word_emb"][input_ids] + prep["pos_emb"][None, :S, :]
    x = _layer_norm(emb, prep["emb_ln_g"], prep["emb_ln_b"]).astype(jnp.float32)
    mask_bias = ((1.0 - mask.astype(jnp.float32)) * -1e9)[:, None, :]   # (B,1,S)

    if Bpad != B:   # pad batch to a multiple of the batch block
        x = jnp.pad(x, ((0, Bpad - B), (0, 0), (0, 0)))
        mask_bias = jnp.pad(mask_bias, ((0, Bpad - B), (0, 0), (0, 0)))

    layer_args = prep["layer_args"]
    head_args = prep["head_args"]

    def layer_spec(arr):        # stacked [L, ...] weights: one layer slice per step
        nd = arr.ndim
        return pl.BlockSpec((1,) + arr.shape[1:],
                            lambda b, l, _nd=nd: (l,) + (0,) * (_nd - 1))

    def const_spec(arr):        # shared head weights: constant index
        nd = arr.ndim
        return pl.BlockSpec(arr.shape, lambda b, l, _nd=nd: (0,) * _nd)

    in_specs = (
        [pl.BlockSpec((Bblk, S, H), lambda b, l: (b, 0, 0)),
         pl.BlockSpec((Bblk, 1, S), lambda b, l: (b, 0, 0))]
        + [layer_spec(a) for a in layer_args]
        + [const_spec(a) for a in head_args]
    )
    # Note: on v5e, if the w1/w2 DMA is exposed at real sizes, raise just those
    # specs to pipeline_mode=pl.Buffered(3) (don't copy blindly to v7x).

    kernel = functools.partial(fused_bert_kernel, num_heads=num_heads)
    logits = pl.pallas_call(
        kernel,
        out_shape=jax.ShapeDtypeStruct((Bchunks, Bblk, Cp), jnp.float32),
        grid=(Bchunks, L),
        in_specs=in_specs,
        out_specs=pl.BlockSpec((1, Bblk, Cp), lambda b, l: (b, 0, 0)),
        scratch_shapes=[pltpu.VMEM((Bblk * S, H), jnp.float32)],
        compiler_params=pltpu.CompilerParams(
            dimension_semantics=("parallel", "arbitrary"),
            vmem_limit_bytes=32 * 1024 * 1024),
    )(x, mask_bias, *layer_args, *head_args)
    return logits.reshape(Bpad, Cp)[:B, :n_cats]


# ----------------------------------------------------------------------------
# pure-JAX reference (mirrors the kernel's bf16-MXU / f32-elementwise math)
# ----------------------------------------------------------------------------
def ref_forward(params, input_ids, mask, *, num_heads):
    B, S = input_ids.shape
    H = params["word_emb"].shape[1]
    hd = H // num_heads

    def mm(a, w):  # bf16 operands, f32 accumulation — mirrors kernel MXU usage
        return jnp.matmul(a.astype(jnp.bfloat16), w.astype(jnp.bfloat16),
                          preferred_element_type=jnp.float32)

    emb = params["word_emb"][input_ids] + params["pos_emb"][None, :S, :]
    x = _layer_norm(emb, params["emb_ln_g"], params["emb_ln_b"])
    mask_bias = ((1.0 - mask.astype(jnp.float32)) * -1e9)[:, None, None, :]

    for lp in params["layers"]:
        q = mm(x, lp["wq"]) + lp["bq"]
        k = mm(x, lp["wk"]) + lp["bk"]
        v = mm(x, lp["wv"]) + lp["bv"]

        def split(t):   # (B,S,H) -> (B,NH,S,hd)
            return t.reshape(B, S, num_heads, hd).transpose(0, 2, 1, 3)

        qh, kh, vh = split(q), split(k), split(v)
        scores = jnp.einsum("bnqd,bnkd->bnqk", qh.astype(jnp.bfloat16),
                            kh.astype(jnp.bfloat16),
                            preferred_element_type=jnp.float32) / math.sqrt(hd)
        scores = scores + mask_bias
        probs = jax.nn.softmax(scores, axis=-1)
        ctx = jnp.einsum("bnqk,bnkd->bnqd", probs.astype(jnp.bfloat16),
                         vh.astype(jnp.bfloat16),
                         preferred_element_type=jnp.float32)
        ctx = ctx.transpose(0, 2, 1, 3).reshape(B, S, H)

        attn = mm(ctx, lp["wo"]) + lp["bo"]
        h1 = _layer_norm(x + attn, lp["ln1_g"], lp["ln1_b"])
        ffn = jax.nn.gelu(mm(h1, lp["w1"]) + lp["b1"])
        ffn = mm(ffn, lp["w2"]) + lp["b2"]
        x = _layer_norm(h1 + ffn, lp["ln2_g"], lp["ln2_b"])

    cls_tok = x[:, 0, :]
    pooled = jnp.tanh(mm(cls_tok, params["pooler_w"]) + params["pooler_b"])
    logits = mm(pooled, params["cls_w"]) + params["cls_b"]
    return jnp.maximum(logits, 0.0)


# ----------------------------------------------------------------------------
# deterministic parameter init
# ----------------------------------------------------------------------------
def init_params(key, *, vocab, max_pos, hidden, inter, n_layers, n_cats):
    def dense(k, shape, scale=0.02):
        return scale * jax.random.normal(k, shape, dtype=jnp.float32)

    keys = jax.random.split(key, 6 + n_layers)
    params = {
        "word_emb": dense(keys[0], (vocab, hidden)),
        "pos_emb": dense(keys[1], (max_pos, hidden)),
        "emb_ln_g": jnp.ones((hidden,), jnp.float32),
        "emb_ln_b": jnp.zeros((hidden,), jnp.float32),
        "pooler_w": dense(keys[2], (hidden, hidden)),
        "pooler_b": dense(keys[3], (hidden,), 0.01),
        "cls_w": dense(keys[4], (hidden, n_cats)),
        "cls_b": dense(keys[5], (n_cats,), 0.01),
        "layers": [],
    }
    for i in range(n_layers):
        lk = jax.random.split(keys[6 + i], 12)
        params["layers"].append({
            "wq": dense(lk[0], (hidden, hidden)), "bq": dense(lk[1], (hidden,), 0.01),
            "wk": dense(lk[2], (hidden, hidden)), "bk": dense(lk[3], (hidden,), 0.01),
            "wv": dense(lk[4], (hidden, hidden)), "bv": dense(lk[5], (hidden,), 0.01),
            "wo": dense(lk[6], (hidden, hidden)), "bo": dense(lk[7], (hidden,), 0.01),
            "ln1_g": jnp.ones((hidden,), jnp.float32),
            "ln1_b": jnp.zeros((hidden,), jnp.float32),
            "w1": dense(lk[8], (hidden, inter)), "b1": dense(lk[9], (inter,), 0.01),
            "w2": dense(lk[10], (inter, hidden)), "b2": dense(lk[11], (hidden,), 0.01),
            "ln2_g": jnp.ones((hidden,), jnp.float32),
            "ln2_b": jnp.zeros((hidden,), jnp.float32),
        })
    return params


# ----------------------------------------------------------------------------
# main
# ----------------------------------------------------------------------------
if __name__ == "__main__":
    # batch=4, seq=8, hidden=128 (lane-dense), 2 heads, FFN=512, 4 classes, 2 layers
    B, S, H, NH, I, V, C, L = 4, 8, 128, 2, 512, 96, 4, 2
    # Fold 2 batch rows per grid step -> M=16-row matmuls and 2 "parallel"
    # batch chunks (keeps both v7x TensorCores fed; on v5e/v6e one chunk would
    # also be fine and would stream the layer weights only once).
    BBLK = 2

    key = jax.random.PRNGKey(0)
    pkey, ikey = jax.random.split(key)
    params = init_params(pkey, vocab=V, max_pos=S, hidden=H, inter=I,
                         n_layers=L, n_cats=C)

    input_ids = jax.random.randint(ikey, (B, S), 0, V, dtype=jnp.int32)
    mask = jnp.ones((B, S), jnp.int32).at[1, 6:].set(0).at[3, 5:].set(0)

    # One-time weight prep (stack/concat/bf16-cast/pad) — hoisted out of the
    # per-call jitted path.
    prep = prepare_weights(params, num_heads=NH)

    fwd = jax.jit(functools.partial(bert_classifier_forward, num_heads=NH,
                                    batch_block=BBLK, n_cats=C))
    out = jax.block_until_ready(fwd(prep, input_ids, mask))

    ref = ref_forward(params, input_ids, mask, num_heads=NH)
    assert out.shape == (B, C), out.shape
    assert jnp.allclose(out, ref, atol=2e-2, rtol=2e-2), (out, ref)

    print("KERNEL_OK")
</pallas_src>

<mosaic_0001>
module attributes {stable_mosaic.version = 11 : i64} {
  func.func @fused_bert_kernel(%arg0: i32, %arg1: i32, %arg2: memref<2x8x128xf32, #tpu.memory_space<vmem>>, %arg3: memref<2x1x8xf32, #tpu.memory_space<vmem>>, %arg4: memref<1x128x384xbf16, #tpu.memory_space<vmem>>, %arg5: memref<1x1x384xf32, #tpu.memory_space<vmem>>, %arg6: memref<1x128x128xbf16, #tpu.memory_space<vmem>>, %arg7: memref<1x1x128xf32, #tpu.memory_space<vmem>>, %arg8: memref<1x1x128xf32, #tpu.memory_space<vmem>>, %arg9: memref<1x1x128xf32, #tpu.memory_space<vmem>>, %arg10: memref<1x128x512xbf16, #tpu.memory_space<vmem>>, %arg11: memref<1x1x512xf32, #tpu.memory_space<vmem>>, %arg12: memref<1x512x128xbf16, #tpu.memory_space<vmem>>, %arg13: memref<1x1x128xf32, #tpu.memory_space<vmem>>, %arg14: memref<1x1x128xf32, #tpu.memory_space<vmem>>, %arg15: memref<1x1x128xf32, #tpu.memory_space<vmem>>, %arg16: memref<128x128xbf16, #tpu.memory_space<vmem>>, %arg17: memref<1x128xf32, #tpu.memory_space<vmem>>, %arg18: memref<128x128xbf16, #tpu.memory_space<vmem>>, %arg19: memref<1x128xf32, #tpu.memory_space<vmem>>, %arg20: memref<1x2x128xf32, #tpu.memory_space<vmem>>, %arg21: memref<16x128xf32, #tpu.memory_space<vmem>>) attributes {dimension_semantics = [#tpu.dimension_semantics<parallel>, #tpu.dimension_semantics<arbitrary>], iteration_bounds = array<i64: 2, 2>, scalar_prefetch = 0 : i64, scratch_operands = 1 : i64, tpu.core_type = #tpu.core_type<tc>, window_params = [{transform_indices = @transform_0, window_bounds = array<i64: 2, 8, 128>}, {transform_indices = @transform_1, window_bounds = array<i64: 2, 1, 8>}, {transform_indices = @transform_2, window_bounds = array<i64: 1, 128, 384>}, {transform_indices = @transform_3, window_bounds = array<i64: 1, 1, 384>}, {transform_indices = @transform_4, window_bounds = array<i64: 1, 128, 128>}, {transform_indices = @transform_5, window_bounds = array<i64: 1, 1, 128>}, {transform_indices = @transform_6, window_bounds = array<i64: 1, 1, 128>}, {transform_indices = @transform_7, window_bounds = array<i64: 1, 1, 128>}, {transform_indices = @transform_8, window_bounds = array<i64: 1, 128, 512>}, {transform_indices = @transform_9, window_bounds = array<i64: 1, 1, 512>}, {transform_indices = @transform_10, window_bounds = array<i64: 1, 512, 128>}, {transform_indices = @transform_11, window_bounds = array<i64: 1, 1, 128>}, {transform_indices = @transform_12, window_bounds = array<i64: 1, 1, 128>}, {transform_indices = @transform_13, window_bounds = array<i64: 1, 1, 128>}, {pipeline_mode = #tpu.pipeline_mode<synchronous>, transform_indices = @transform_14, window_bounds = array<i64: 128, 128>}, {pipeline_mode = #tpu.pipeline_mode<synchronous>, transform_indices = @transform_15, window_bounds = array<i64: 1, 128>}, {pipeline_mode = #tpu.pipeline_mode<synchronous>, transform_indices = @transform_16, window_bounds = array<i64: 128, 128>}, {pipeline_mode = #tpu.pipeline_mode<synchronous>, transform_indices = @transform_17, window_bounds = array<i64: 1, 128>}, {transform_indices = @transform_18, window_bounds = array<i64: 1, 2, 128>}]} {
    %c0_i32 = arith.constant 0 : i32
    %0 = arith.cmpi eq, %arg1, %c0_i32 : i32
    %1 = arith.extui %0 : i1 to i32
    %c0_i32_0 = arith.constant 0 : i32
    %2 = arith.cmpi ne, %1, %c0_i32_0 : i32
    scf.if %2 {
      %c0_69 = arith.constant 0 : index
      %c0_70 = arith.constant 0 : index
      %c0_71 = arith.constant 0 : index
      %148 = vector.load %arg2[%c0_69, %c0_70, %c0_71] : memref<2x8x128xf32, #tpu.memory_space<vmem>>, vector<2x8x128xf32>
      %149 = vector.shape_cast %148 : vector<2x8x128xf32> to vector<16x128xf32>
      %c0_72 = arith.constant 0 : index
      %c0_73 = arith.constant 0 : index
      %150 = vector.load %arg21[%c0_72, %c0_73] : memref<16x128xf32, #tpu.memory_space<vmem>>, vector<16x128xf32>
      tpu.vector_store %arg21[%c0_72, %c0_73], %149 {strides = array<i32>} : memref<16x128xf32, #tpu.memory_space<vmem>>, vector<16x128xf32>,
    } else {
    }
    %c0 = arith.constant 0 : index
    %c0_1 = arith.constant 0 : index
    %3 = vector.load %arg21[%c0, %c0_1] : memref<16x128xf32, #tpu.memory_space<vmem>>, vector<16x128xf32>
    %4 = arith.truncf %3 : vector<16x128xf32> to vector<16x128xbf16>
    %c0_2 = arith.constant 0 : index
    %c0_3 = arith.constant 0 : index
    %c0_4 = arith.constant 0 : index
    %5 = vector.load %arg4[%c0_2, %c0_3, %c0_4] : memref<1x128x384xbf16, #tpu.memory_space<vmem>>, vector<1x128x384xbf16>
    %6 = vector.shape_cast %5 : vector<1x128x384xbf16> to vector<128x384xbf16>
    %cst = arith.constant dense<0.000000e+00> : vector<16x384xf32>
    %7 = tpu.matmul %4, %6, %cst {dimension_numbers = #tpu.dot_dimension_numbers<[1], [0], [0], [1], [0, 0, 1, 1], [], []>} : vector<16x128xbf16>, vector<128x384xbf16>, vector<16x384xf32> -> vector<16x384xf32>
    %c0_5 = arith.constant 0 : index
    %c0_6 = arith.constant 0 : index
    %c0_7 = arith.constant 0 : index
    %8 = vector.load %arg5[%c0_5, %c0_6, %c0_7] : memref<1x1x384xf32, #tpu.memory_space<vmem>>, vector<1x1x384xf32>
    %9 = vector.shape_cast %8 : vector<1x1x384xf32> to vector<1x384xf32>
    %10 = vector.broadcast %9 : vector<1x384xf32> to vector<16x384xf32>
    %11 = arith.addf %7, %10 : vector<16x384xf32>
    %12 = vector.shape_cast %11 : vector<16x384xf32> to vector<2x8x384xf32>
    %13 = arith.truncf %12 : vector<2x8x384xf32> to vector<2x8x384xbf16>
    %c0_8 = arith.constant 0 : index
    %c0_9 = arith.constant 0 : index
    %c0_10 = arith.constant 0 : index
    %14 = vector.load %arg3[%c0_8, %c0_9, %c0_10] : memref<2x1x8xf32, #tpu.memory_space<vmem>>, vector<2x1x8xf32>
    %15 = vector.extract_strided_slice %13 {offsets = [0, 0, 0], sizes = [2, 8, 64], strides = [1, 1, 1]} : vector<2x8x384xbf16> to vector<2x8x64xbf16>
    %16 = vector.extract_strided_slice %13 {offsets = [0, 0, 128], sizes = [2, 8, 64], strides = [1, 1, 1]} : vector<2x8x384xbf16> to vector<2x8x64xbf16>
    %17 = vector.extract_strided_slice %13 {offsets = [0, 0, 256], sizes = [2, 8, 64], strides = [1, 1, 1]} : vector<2x8x384xbf16> to vector<2x8x64xbf16>
    "tpu.trace_start"() <{level = 10 : i32, message = "bqd,bkd->bqk"}> : () -> ()
    %cst_11 = arith.constant dense<0.000000e+00> : vector<2x8x8xf32>
    %18 = tpu.matmul %15, %16, %cst_11 {dimension_numbers = #tpu.dot_dimension_numbers<[2], [2], [1], [1], [0, 0, 0, 1, 1, 1], [0], [0]>} : vector<2x8x64xbf16>, vector<2x8x64xbf16>, vector<2x8x8xf32> -> vector<2x8x8xf32>
    "tpu.trace_stop"() : () -> ()
    %19 = vector.broadcast %14 : vector<2x1x8xf32> to vector<2x8x8xf32>
    %20 = arith.addf %18, %19 : vector<2x8x8xf32>
    %cst_12 = arith.constant dense<0xFF800000> : vector<2x8xf32>
    %21 = vector.multi_reduction <maximumf>, %20, %cst_12 [2] : vector<2x8x8xf32> to vector<2x8xf32>
    %22 = vector.shape_cast %21 : vector<2x8xf32> to vector<2x8x1xf32>
    %23 = vector.broadcast %22 : vector<2x8x1xf32> to vector<2x8x8xf32>
    %24 = arith.subf %20, %23 : vector<2x8x8xf32>
    %25 = math.exp %24 : vector<2x8x8xf32>
    %cst_13 = arith.constant dense<0.000000e+00> : vector<2x8xf32>
    %26 = vector.multi_reduction <add>, %25, %cst_13 [2] : vector<2x8x8xf32> to vector<2x8xf32>
    %27 = vector.shape_cast %26 : vector<2x8xf32> to vector<2x8x1xf32>
    %28 = tpu.reciprocal %27 {approx = true} : vector<2x8x1xf32> -> vector<2x8x1xf32>
    %29 = vector.broadcast %28 : vector<2x8x1xf32> to vector<2x8x8xf32>
    %30 = arith.mulf %25, %29 : vector<2x8x8xf32>
    %31 = arith.truncf %30 : vector<2x8x8xf32> to vector<2x8x8xbf16>
    "tpu.trace_start"() <{level = 10 : i32, message = "bqk,bkd->bqd"}> : () -> ()
    %cst_14 = arith.constant dense<0.000000e+00> : vector<2x8x64xf32>
    %32 = tpu.matmul %31, %17, %cst_14 {dimension_numbers = #tpu.dot_dimension_numbers<[2], [1], [1], [2], [0, 0, 0, 1, 1, 2], [0], [0]>} : vector<2x8x8xbf16>, vector<2x8x64xbf16>, vector<2x8x64xf32> -> vector<2x8x64xf32>
    "tpu.trace_stop"() : () -> ()
    %33 = vector.extract_strided_slice %13 {offsets = [0, 0, 64], sizes = [2, 8, 64], strides = [1, 1, 1]} : vector<2x8x384xbf16> to vector<2x8x64xbf16>
    %34 = vector.extract_strided_slice %13 {offsets = [0, 0, 192], sizes = [2, 8, 64], strides = [1, 1, 1]} : vector<2x8x384xbf16> to vector<2x8x64xbf16>
    %35 = vector.extract_strided_slice %13 {offsets = [0, 0, 320], sizes = [2, 8, 64], strides = [1, 1, 1]} : vector<2x8x384xbf16> to vector<2x8x64xbf16>
    "tpu.trace_start"() <{level = 10 : i32, message = "bqd,bkd->bqk"}> : () -> ()
    %cst_15 = arith.constant dense<0.000000e+00> : vector<2x8x8xf32>
    %36 = tpu.matmul %33, %34, %cst_15 {dimension_numbers = #tpu.dot_dimension_numbers<[2], [2], [1], [1], [0, 0, 0, 1, 1, 1], [0], [0]>} : vector<2x8x64xbf16>, vector<2x8x64xbf16>, vector<2x8x8xf32> -> vector<2x8x8xf32>
    "tpu.trace_stop"() : () -> ()
    %37 = vector.broadcast %14 : vector<2x1x8xf32> to vector<2x8x8xf32>
    %38 = arith.addf %36, %37 : vector<2x8x8xf32>
    %cst_16 = arith.constant dense<0xFF800000> : vector<2x8xf32>
    %39 = vector.multi_reduction <maximumf>, %38, %cst_16 [2] : vector<2x8x8xf32> to vector<2x8xf32>
    %40 = vector.shape_cast %39 : vector<2x8xf32> to vector<2x8x1xf32>
    %41 = vector.broadcast %40 : vector<2x8x1xf32> to vector<2x8x8xf32>
    %42 = arith.subf %38, %41 : vector<2x8x8xf32>
    %43 = math.exp %42 : vector<2x8x8xf32>
    %cst_17 = arith.constant dense<0.000000e+00> : vector<2x8xf32>
    %44 = vector.multi_reduction <add>, %43, %cst_17 [2] : vector<2x8x8xf32> to vector<2x8xf32>
    %45 = vector.shape_cast %44 : vector<2x8xf32> to vector<2x8x1xf32>
    %46 = tpu.reciprocal %45 {approx = true} : vector<2x8x1xf32> -> vector<2x8x1xf32>
    %47 = vector.broadcast %46 : vector<2x8x1xf32> to vector<2x8x8xf32>
    %48 = arith.mulf %43, %47 : vector<2x8x8xf32>
    %49 = arith.truncf %48 : vector<2x8x8xf32> to vector<2x8x8xbf16>
    "tpu.trace_start"() <{level = 10 : i32, message = "bqk,bkd->bqd"}> : () -> ()
    %cst_18 = arith.constant dense<0.000000e+00> : vector<2x8x64xf32>
    %50 = tpu.matmul %49, %35, %cst_18 {dimension_numbers = #tpu.dot_dimension_numbers<[2], [1], [1], [2], [0, 0, 0, 1, 1, 2], [0], [0]>} : vector<2x8x8xbf16>, vector<2x8x64xbf16>, vector<2x8x64xf32> -> vector<2x8x64xf32>
    "tpu.trace_stop"() : () -> ()
    %51 = tpu.concatenate %32, %50 in 2 : vector<2x8x64xf32>, vector<2x8x64xf32> -> vector<2x8x128xf32>
    %52 = vector.shape_cast %51 : vector<2x8x128xf32> to vector<16x128xf32>
    %53 = arith.truncf %52 : vector<16x128xf32> to vector<16x128xbf16>
    %c0_19 = arith.constant 0 : index
    %c0_20 = arith.constant 0 : index
    %c0_21 = arith.constant 0 : index
    %54 = vector.load %arg6[%c0_19, %c0_20, %c0_21] : memref<1x128x128xbf16, #tpu.memory_space<vmem>>, vector<1x128x128xbf16>
    %55 = vector.shape_cast %54 : vector<1x128x128xbf16> to vector<128x128xbf16>
    %cst_22 = arith.constant dense<0.000000e+00> : vector<16x128xf32>
    %56 = tpu.matmul %53, %55, %cst_22 {dimension_numbers = #tpu.dot_dimension_numbers<[1], [0], [0], [1], [0, 0, 1, 1], [], []>} : vector<16x128xbf16>, vector<128x128xbf16>, vector<16x128xf32> -> vector<16x128xf32>
    %c0_23 = arith.constant 0 : index
    %c0_24 = arith.constant 0 : index
    %c0_25 = arith.constant 0 : index
    %57 = vector.load %arg7[%c0_23, %c0_24, %c0_25] : memref<1x1x128xf32, #tpu.memory_space<vmem>>, vector<1x1x128xf32>
    %58 = vector.shape_cast %57 : vector<1x1x128xf32> to vector<1x128xf32>
    %59 = vector.broadcast %58 : vector<1x128xf32> to vector<16x128xf32>
    %60 = arith.addf %56, %59 : vector<16x128xf32>
    %61 = arith.addf %3, %60 : vector<16x128xf32>
    %c0_26 = arith.constant 0 : index
    %c0_27 = arith.constant 0 : index
    %c0_28 = arith.constant 0 : index
    %62 = vector.load %arg8[%c0_26, %c0_27, %c0_28] : memref<1x1x128xf32, #tpu.memory_space<vmem>>, vector<1x1x128xf32>
    %63 = vector.shape_cast %62 : vector<1x1x128xf32> to vector<1x128xf32>
    %c0_29 = arith.constant 0 : index
    %c0_30 = arith.constant 0 : index
    %c0_31 = arith.constant 0 : index
    %64 = vector.load %arg9[%c0_29, %c0_30, %c0_31] : memref<1x1x128xf32, #tpu.memory_space<vmem>>, vector<1x1x128xf32>
    %65 = vector.shape_cast %64 : vector<1x1x128xf32> to vector<1x128xf32>
    %cst_32 = arith.constant dense<0.000000e+00> : vector<16xf32>
    %66 = vector.multi_reduction <add>, %61, %cst_32 [1] : vector<16x128xf32> to vector<16xf32>
    %67 = vector.shape_cast %66 : vector<16xf32> to vector<16x1xf32>
    %cst_33 = arith.constant 1.280000e+02 : f32
    %68 = vector.broadcast %cst_33 : f32 to vector<16x1xf32>
    %69 = arith.divf %67, %68 : vector<16x1xf32>
    %70 = vector.broadcast %69 : vector<16x1xf32> to vector<16x128xf32>
    %71 = arith.subf %61, %70 : vector<16x128xf32>
    %72 = arith.mulf %71, %71 : vector<16x128xf32>
    %cst_34 = arith.constant dense<0.000000e+00> : vector<16xf32>
    %73 = vector.multi_reduction <add>, %72, %cst_34 [1] : vector<16x128xf32> to vector<16xf32>
    %74 = vector.shape_cast %73 : vector<16xf32> to vector<16x1xf32>
    %cst_35 = arith.constant 1.280000e+02 : f32
    %75 = vector.broadcast %cst_35 : f32 to vector<16x1xf32>
    %76 = arith.divf %74, %75 : vector<16x1xf32>
    %77 = vector.broadcast %69 : vector<16x1xf32> to vector<16x128xf32>
    %78 = arith.subf %61, %77 : vector<16x128xf32>
    %cst_36 = arith.constant 9.99999996E-13 : f32
    %79 = vector.broadcast %cst_36 : f32 to vector<16x1xf32>
    %80 = arith.addf %76, %79 : vector<16x1xf32>
    %81 = math.rsqrt %80 : vector<16x1xf32>
    %82 = vector.broadcast %81 : vector<16x1xf32> to vector<16x128xf32>
    %83 = arith.mulf %78, %82 : vector<16x128xf32>
    %84 = vector.broadcast %63 : vector<1x128xf32> to vector<16x128xf32>
    %85 = arith.mulf %83, %84 : vector<16x128xf32>
    %86 = vector.broadcast %65 : vector<1x128xf32> to vector<16x128xf32>
    %87 = arith.addf %85, %86 : vector<16x128xf32>
    %88 = arith.truncf %87 : vector<16x128xf32> to vector<16x128xbf16>
    %c0_37 = arith.constant 0 : index
    %c0_38 = arith.constant 0 : index
    %c0_39 = arith.constant 0 : index
    %89 = vector.load %arg10[%c0_37, %c0_38, %c0_39] : memref<1x128x512xbf16, #tpu.memory_space<vmem>>, vector<1x128x512xbf16>
    %90 = vector.shape_cast %89 : vector<1x128x512xbf16> to vector<128x512xbf16>
    %cst_40 = arith.constant dense<0.000000e+00> : vector<16x512xf32>
    %91 = tpu.matmul %88, %90, %cst_40 {dimension_numbers = #tpu.dot_dimension_numbers<[1], [0], [0], [1], [0, 0, 1, 1], [], []>} : vector<16x128xbf16>, vector<128x512xbf16>, vector<16x512xf32> -> vector<16x512xf32>
    %c0_41 = arith.constant 0 : index
    %c0_42 = arith.constant 0 : index
    %c0_43 = arith.constant 0 : index
    %92 = vector.load %arg11[%c0_41, %c0_42, %c0_43] : memref<1x1x512xf32, #tpu.memory_space<vmem>>, vector<1x1x512xf32>
    %93 = vector.shape_cast %92 : vector<1x1x512xf32> to vector<1x512xf32>
    %94 = vector.broadcast %93 : vector<1x512xf32> to vector<16x512xf32>
    %95 = arith.addf %91, %94 : vector<16x512xf32>
    %96 = arith.mulf %95, %95 : vector<16x512xf32>
    %97 = arith.mulf %95, %96 : vector<16x512xf32>
    %cst_44 = arith.constant 4.471500e-02 : f32
    %98 = vector.broadcast %cst_44 : f32 to vector<16x512xf32>
    %99 = arith.mulf %98, %97 : vector<16x512xf32>
    %100 = arith.addf %95, %99 : vector<16x512xf32>
    %cst_45 = arith.constant 0.797884583 : f32
    %101 = vector.broadcast %cst_45 : f32 to vector<16x512xf32>
    %102 = arith.mulf %101, %100 : vector<16x512xf32>
    %103 = math.tanh %102 : vector<16x512xf32>
    %cst_46 = arith.constant 1.000000e+00 : f32
    %104 = vector.broadcast %cst_46 : f32 to vector<16x512xf32>
    %105 = arith.addf %104, %103 : vector<16x512xf32>
    %cst_47 = arith.constant 5.000000e-01 : f32
    %106 = vector.broadcast %cst_47 : f32 to vector<16x512xf32>
    %107 = arith.mulf %106, %105 : vector<16x512xf32>
    %108 = arith.mulf %95, %107 : vector<16x512xf32>
    %109 = arith.truncf %108 : vector<16x512xf32> to vector<16x512xbf16>
    %c0_48 = arith.constant 0 : index
    %c0_49 = arith.constant 0 : index
    %c0_50 = arith.constant 0 : index
    %110 = vector.load %arg12[%c0_48, %c0_49, %c0_50] : memref<1x512x128xbf16, #tpu.memory_space<vmem>>, vector<1x512x128xbf16>
    %111 = vector.shape_cast %110 : vector<1x512x128xbf16> to vector<512x128xbf16>
    %cst_51 = arith.constant dense<0.000000e+00> : vector<16x128xf32>
    %112 = tpu.matmul %109, %111, %cst_51 {dimension_numbers = #tpu.dot_dimension_numbers<[1], [0], [0], [1], [0, 0, 1, 1], [], []>} : vector<16x512xbf16>, vector<512x128xbf16>, vector<16x128xf32> -> vector<16x128xf32>
    %c0_52 = arith.constant 0 : index
    %c0_53 = arith.constant 0 : index
    %c0_54 = arith.constant 0 : index
    %113 = vector.load %arg13[%c0_52, %c0_53, %c0_54] : memref<1x1x128xf32, #tpu.memory_space<vmem>>, vector<1x1x128xf32>
    %114 = vector.shape_cast %113 : vector<1x1x128xf32> to vector<1x128xf32>
    %115 = vector.broadcast %114 : vector<1x128xf32> to vector<16x128xf32>
    %116 = arith.addf %112, %115 : vector<16x128xf32>
    %117 = arith.addf %87, %116 : vector<16x128xf32>
    %c0_55 = arith.constant 0 : index
    %c0_56 = arith.constant 0 : index
    %c0_57 = arith.constant 0 : index
    %118 = vector.load %arg14[%c0_55, %c0_56, %c0_57] : memref<1x1x128xf32, #tpu.memory_space<vmem>>, vector<1x1x128xf32>
    %119 = vector.shape_cast %118 : vector<1x1x128xf32> to vector<1x128xf32>
    %c0_58 = arith.constant 0 : index
    %c0_59 = arith.constant 0 : index
    %c0_60 = arith.constant 0 : index
    %120 = vector.load %arg15[%c0_58, %c0_59, %c0_60] : memref<1x1x128xf32, #tpu.memory_space<vmem>>, vector<1x1x128xf32>
    %121 = vector.shape_cast %120 : vector<1x1x128xf32> to vector<1x128xf32>
    %cst_61 = arith.constant dense<0.000000e+00> : vector<16xf32>
    %122 = vector.multi_reduction <add>, %117, %cst_61 [1] : vector<16x128xf32> to vector<16xf32>
    %123 = vector.shape_cast %122 : vector<16xf32> to vector<16x1xf32>
    %cst_62 = arith.constant 1.280000e+02 : f32
    %124 = vector.broadcast %cst_62 : f32 to vector<16x1xf32>
    %125 = arith.divf %123, %124 : vector<16x1xf32>
    %126 = vector.broadcast %125 : vector<16x1xf32> to vector<16x128xf32>
    %127 = arith.subf %117, %126 : vector<16x128xf32>
    %128 = arith.mulf %127, %127 : vector<16x128xf32>
    %cst_63 = arith.constant dense<0.000000e+00> : vector<16xf32>
    %129 = vector.multi_reduction <add>, %128, %cst_63 [1] : vector<16x128xf32> to vector<16xf32>
    %130 = vector.shape_cast %129 : vector<16xf32> to vector<16x1xf32>
    %cst_64 = arith.constant 1.280000e+02 : f32
    %131 = vector.broadcast %cst_64 : f32 to vector<16x1xf32>
    %132 = arith.divf %130, %131 : vector<16x1xf32>
    %133 = vector.broadcast %125 : vector<16x1xf32> to vector<16x128xf32>
    %134 = arith.subf %117, %133 : vector<16x128xf32>
    %cst_65 = arith.constant 9.99999996E-13 : f32
    %135 = vector.broadcast %cst_65 : f32 to vector<16x1xf32>
    %136 = arith.addf %132, %135 : vector<16x1xf32>
    %137 = math.rsqrt %136 : vector<16x1xf32>
    %138 = vector.broadcast %137 : vector<16x1xf32> to vector<16x128xf32>
    %139 = arith.mulf %134, %138 : vector<16x128xf32>
    %140 = vector.broadcast %119 : vector<1x128xf32> to vector<16x128xf32>
    %141 = arith.mulf %139, %140 : vector<16x128xf32>
    %142 = vector.broadcast %121 : vector<1x128xf32> to vector<16x128xf32>
    %143 = arith.addf %141, %142 : vector<16x128xf32>
    %c0_66 = arith.constant 0 : index
    %c0_67 = arith.constant 0 : index
    %144 = vector.load %arg21[%c0_66, %c0_67] : memref<16x128xf32, #tpu.memory_space<vmem>>, vector<16x128xf32>
    tpu.vector_store %arg21[%c0_66, %c0_67], %143 {strides = array<i32>} : memref<16x128xf32, #tpu.memory_space<vmem>>, vector<16x128xf32>,
    %c1_i32 = arith.constant 1 : i32
    %145 = arith.cmpi eq, %arg1, %c1_i32 : i32
    %146 = arith.extui %145 : i1 to i32
    %c0_i32_68 = arith.constant 0 : i32
    %147 = arith.cmpi ne, %146, %c0_i32_68 : i32
    scf.if %147 {
      %148 = vector.shape_cast %143 : vector<16x128xf32> to vector<2x8x128xf32>
      %149 = vector.extract_strided_slice %148 {offsets = [0, 0, 0], sizes = [2, 1, 128], strides = [1, 1, 1]} : vector<2x8x128xf32> to vector<2x1x128xf32>
      %150 = vector.shape_cast %149 : vector<2x1x128xf32> to vector<2x128xf32>
      %151 = arith.truncf %150 : vector<2x128xf32> to vector<2x128xbf16>
      %c0_69 = arith.constant 0 : index
      %c0_70 = arith.constant 0 : index
      %152 = vector.load %arg16[%c0_69, %c0_70] : memref<128x128xbf16, #tpu.memory_space<vmem>>, vector<128x128xbf16>
      %cst_71 = arith.constant dense<0.000000e+00> : vector<2x128xf32>
      %153 = tpu.matmul %151, %152, %cst_71 {dimension_numbers = #tpu.dot_dimension_numbers<[1], [0], [0], [1], [0, 0, 1, 1], [], []>} : vector<2x128xbf16>, vector<128x128xbf16>, vector<2x128xf32> -> vector<2x128xf32>
      %c0_72 = arith.constant 0 : index
      %c0_73 = arith.constant 0 : index
      %154 = vector.load %arg17[%c0_72, %c0_73] : memref<1x128xf32, #tpu.memory_space<vmem>>, vector<1x128xf32>
      %155 = vector.broadcast %154 : vector<1x128xf32> to vector<2x128xf32>
      %156 = arith.addf %153, %155 : vector<2x128xf32>
      %157 = math.tanh %156 : vector<2x128xf32>
      %158 = arith.truncf %157 : vector<2x128xf32> to vector<2x128xbf16>
      %c0_74 = arith.constant 0 : index
      %c0_75 = arith.constant 0 : index
      %159 = vector.load %arg18[%c0_74, %c0_75] : memref<128x128xbf16, #tpu.memory_space<vmem>>, vector<128x128xbf16>
      %cst_76 = arith.constant dense<0.000000e+00> : vector<2x128xf32>
      %160 = tpu.matmul %158, %159, %cst_76 {dimension_numbers = #tpu.dot_dimension_numbers<[1], [0], [0], [1], [0, 0, 1, 1], [], []>} : vector<2x128xbf16>, vector<128x128xbf16>, vector<2x128xf32> -> vector<2x128xf32>
      %c0_77 = arith.constant 0 : index
      %c0_78 = arith.constant 0 : index
      %161 = vector.load %arg19[%c0_77, %c0_78] : memref<1x128xf32, #tpu.memory_space<vmem>>, vector<1x128xf32>
      %162 = vector.broadcast %161 : vector<1x128xf32> to vector<2x128xf32>
      %163 = arith.addf %160, %162 : vector<2x128xf32>
      %cst_79 = arith.constant 0.000000e+00 : f32
      %164 = vector.broadcast %cst_79 : f32 to vector<2x128xf32>
      %165 = arith.maximumf %163, %164 : vector<2x128xf32>
      %c0_80 = arith.constant 0 : index
      %c0_81 = arith.constant 0 : index
      %c0_82 = arith.constant 0 : index
      %166 = vector.load %arg20[%c0_80, %c0_81, %c0_82] : memref<1x2x128xf32, #tpu.memory_space<vmem>>, vector<1x2x128xf32>
      %167 = vector.shape_cast %166 : vector<1x2x128xf32> to vector<2x128xf32>
      %168 = vector.shape_cast %165 : vector<2x128xf32> to vector<1x2x128xf32>
      tpu.vector_store %arg20[%c0_80, %c0_81, %c0_82], %168 {strides = array<i32>} : memref<1x2x128xf32, #tpu.memory_space<vmem>>, vector<1x2x128xf32>,
    } else {
    }
    return
  }
  func.func @transform_0(%arg0: i32, %arg1: i32) -> (i32, i32, i32) {
    %c0_i32 = arith.constant 0 : i32
    %c0_i32_0 = arith.constant 0 : i32
    %c0_i32_1 = arith.constant 0 : i32
    return %arg0, %c0_i32, %c0_i32_0 : i32, i32, i32
  }
  func.func @transform_1(%arg0: i32, %arg1: i32) -> (i32, i32, i32) {
    %c0_i32 = arith.constant 0 : i32
    %c0_i32_0 = arith.constant 0 : i32
    %c0_i32_1 = arith.constant 0 : i32
    return %arg0, %c0_i32, %c0_i32_0 : i32, i32, i32
  }
  func.func @transform_2(%arg0: i32, %arg1: i32) -> (i32, i32, i32) {
    %c0_i32 = arith.constant 0 : i32
    %c0_i32_0 = arith.constant 0 : i32
    %c0_i32_1 = arith.constant 0 : i32
    return %arg1, %c0_i32, %c0_i32_0 : i32, i32, i32
  }
  func.func @transform_3(%arg0: i32, %arg1: i32) -> (i32, i32, i32) {
    %c0_i32 = arith.constant 0 : i32
    %c0_i32_0 = arith.constant 0 : i32
    %c0_i32_1 = arith.constant 0 : i32
    return %arg1, %c0_i32, %c0_i32_0 : i32, i32, i32
  }
  func.func @transform_4(%arg0: i32, %arg1: i32) -> (i32, i32, i32) {
    %c0_i32 = arith.constant 0 : i32
    %c0_i32_0 = arith.constant 0 : i32
    %c0_i32_1 = arith.constant 0 : i32
    return %arg1, %c0_i32, %c0_i32_0 : i32, i32, i32
  }
  func.func @transform_5(%arg0: i32, %arg1: i32) -> (i32, i32, i32) {
    %c0_i32 = arith.constant 0 : i32
    %c0_i32_0 = arith.constant 0 : i32
    %c0_i32_1 = arith.constant 0 : i32
    return %arg1, %c0_i32, %c0_i32_0 : i32, i32, i32
  }
  func.func @transform_6(%arg0: i32, %arg1: i32) -> (i32, i32, i32) {
    %c0_i32 = arith.constant 0 : i32
    %c0_i32_0 = arith.constant 0 : i32
    %c0_i32_1 = arith.constant 0 : i32
    return %arg1, %c0_i32, %c0_i32_0 : i32, i32, i32
  }
  func.func @transform_7(%arg0: i32, %arg1: i32) -> (i32, i32, i32) {
    %c0_i32 = arith.constant 0 : i32
    %c0_i32_0 = arith.constant 0 : i32
    %c0_i32_1 = arith.constant 0 : i32
    return %arg1, %c0_i32, %c0_i32_0 : i32, i32, i32
  }
  func.func @transform_8(%arg0: i32, %arg1: i32) -> (i32, i32, i32) {
    %c0_i32 = arith.constant 0 : i32
    %c0_i32_0 = arith.constant 0 : i32
    %c0_i32_1 = arith.constant 0 : i32
    return %arg1, %c0_i32, %c0_i32_0 : i32, i32, i32
  }
  func.func @transform_9(%arg0: i32, %arg1: i32) -> (i32, i32, i32) {
    %c0_i32 = arith.constant 0 : i32
    %c0_i32_0 = arith.constant 0 : i32
    %c0_i32_1 = arith.constant 0 : i32
    return %arg1, %c0_i32, %c0_i32_0 : i32, i32, i32
  }
  func.func @transform_10(%arg0: i32, %arg1: i32) -> (i32, i32, i32) {
    %c0_i32 = arith.constant 0 : i32
    %c0_i32_0 = arith.constant 0 : i32
    %c0_i32_1 = arith.constant 0 : i32
    return %arg1, %c0_i32, %c0_i32_0 : i32, i32, i32
  }
  func.func @transform_11(%arg0: i32, %arg1: i32) -> (i32, i32, i32) {
    %c0_i32 = arith.constant 0 : i32
    %c0_i32_0 = arith.constant 0 : i32
    %c0_i32_1 = arith.constant 0 : i32
    return %arg1, %c0_i32, %c0_i32_0 : i32, i32, i32
  }
  func.func @transform_12(%arg0: i32, %arg1: i32) -> (i32, i32, i32) {
    %c0_i32 = arith.constant 0 : i32
    %c0_i32_0 = arith.constant 0 : i32
    %c0_i32_1 = arith.constant 0 : i32
    return %arg1, %c0_i32, %c0_i32_0 : i32, i32, i32
  }
  func.func @transform_13(%arg0: i32, %arg1: i32) -> (i32, i32, i32) {
    %c0_i32 = arith.constant 0 : i32
    %c0_i32_0 = arith.constant 0 : i32
    %c0_i32_1 = arith.constant 0 : i32
    return %arg1, %c0_i32, %c0_i32_0 : i32, i32, i32
  }
  func.func @transform_14(%arg0: i32, %arg1: i32) -> (i32, i32) {
    %c0_i32 = arith.constant 0 : i32
    %c0_i32_0 = arith.constant 0 : i32
    %c0_i32_1 = arith.constant 0 : i32
    return %c0_i32, %c0_i32_0 : i32, i32
  }
  func.func @transform_15(%arg0: i32, %arg1: i32) -> (i32, i32) {
    %c0_i32 = arith.constant 0 : i32
    %c0_i32_0 = arith.constant 0 : i32
    %c0_i32_1 = arith.constant 0 : i32
    return %c0_i32, %c0_i32_0 : i32, i32
  }
  func.func @transform_16(%arg0: i32, %arg1: i32) -> (i32, i32) {
    %c0_i32 = arith.constant 0 : i32
    %c0_i32_0 = arith.constant 0 : i32
    %c0_i32_1 = arith.constant 0 : i32
    return %c0_i32, %c0_i32_0 : i32, i32
  }
  func.func @transform_17(%arg0: i32, %arg1: i32) -> (i32, i32) {
    %c0_i32 = arith.constant 0 : i32
    %c0_i32_0 = arith.constant 0 : i32
    %c0_i32_1 = arith.constant 0 : i32
    return %c0_i32, %c0_i32_0 : i32, i32
  }
  func.func @transform_18(%arg0: i32, %arg1: i32) -> (i32, i32, i32) {
    %c0_i32 = arith.constant 0 : i32
    %c0_i32_0 = arith.constant 0 : i32
    %c0_i32_1 = arith.constant 0 : i32
    return %arg0, %c0_i32, %c0_i32_0 : i32, i32, i32
  }
}

</mosaic_0001>

<bundles_post_ra>
// kernel: bert_classifier_forward.1
= control target key start
LH: loop header
LB: loop body
LE: loop exit
PB: predicated region body
PF: predicated region fallthrough
CT: control target
= control target key end

     0   :  { %s5388_s0 = inlined_call_operand.vmem [shape: f32[4,8,128], index: 0, kind: input, shape index: {}]   ;;  %s5389_s1 = inlined_call_operand.vmem [shape: f32[4,1,8], index: 1, kind: input, shape index: {}]   ;;  %s5390_s2 = inlined_call_operand.hbm [shape: bf16[2,128,384], index: 2, kind: input, shape index: {}]   ;;  %s5391_s3 = inlined_call_operand.hbm [shape: f32[2,1,384], index: 3, kind: input, shape index: {}]   ;;  %s5392_s4 = inlined_call_operand.hbm [shape: bf16[2,128,128], index: 4, kind: input, shape index: {}]   ;;  %s5393_s5 = inlined_call_operand.hbm [shape: f32[2,1,128], index: 5, kind: input, shape index: {}]   ;;  %s5394_s6 = inlined_call_operand.hbm [shape: f32[2,1,128], index: 6, kind: input, shape index: {}]   ;;  %s5395_s7 = inlined_call_operand.hbm [shape: f32[2,1,128], index: 7, kind: input, shape index: {}]   ;;  %s5396_s8 = inlined_call_operand.vmem [shape: bf16[2,128,512], index: 8, kind: input, shape index: {}]   ;;  %s5397_s9 = inlined_call_operand.hbm [shape: f32[2,1,512], index: 9, kind: input, shape index: {}]   ;;  %s5398_s10 = inlined_call_operand.hbm [shape: bf16[2,512,128], index: 10, kind: input, shape index: {}]   ;;  %s5399_s11 = inlined_call_operand.hbm [shape: f32[2,1,128], index: 11, kind: input, shape index: {}]   ;;  %s5400_s12 = inlined_call_operand.vmem [shape: f32[2,1,128], index: 12, kind: input, shape index: {}]   ;;  %s5401_s13 = inlined_call_operand.hbm [shape: f32[2,1,128], index: 13, kind: input, shape index: {}]   ;;  %s5402_s14 = inlined_call_operand.hbm [shape: bf16[128,128], index: 14, kind: input, shape index: {}]   ;;  %s5403_s15 = inlined_call_operand.vmem [shape: f32[1,128], index: 15, kind: input, shape index: {}]   ;;  %s5404_s16 = inlined_call_operand.hbm [shape: bf16[128,128], index: 16, kind: input, shape index: {}]   ;;  %s5405_s17 = inlined_call_operand.vmem [shape: f32[1,128], index: 17, kind: input, shape index: {}]   ;;  %s5406_s18 = inlined_call_operand.hbm [shape: f32[2,2,128], index: 18, kind: output, shape index: {}]  }
   0x1   :  { %5439 = sst [smem:[#allocation50_spill]] %s5388_s0 }
   0x2   :  { %5440 = sst [smem:[#allocation51_spill]] %s5389_s1 }
   0x3   :  { %5441 = sst [smem:[#allocation52_spill]] %s5390_s2 }
   0x4   :  { %5442 = sst [smem:[#allocation53_spill]] %s5391_s3 }
   0x5   :  { %5443 = sst [smem:[#allocation54_spill]] %s5392_s4 }
   0x6   :  { %5444 = sst [smem:[#allocation55_spill]] %s5393_s5 }
   0x7   :  { %5445 = sst [smem:[#allocation56_spill]] %s5394_s6 }
   0x8   :  { %5446 = sst [smem:[#allocation57_spill]] %s5395_s7 }
   0x9   :  { %5447 = sst [smem:[#allocation58_spill]] %s5396_s8 }
   0xa   :  { %5448 = sst [smem:[#allocation59_spill]] %s5397_s9 }
   0xb   :  { %5449 = sst [smem:[#allocation60_spill]] %s5398_s10 }
   0xc   :  { %5450 = sst [smem:[#allocation61_spill]] %s5399_s11 }
   0xd   :  { %5451 = sst [smem:[#allocation62_spill]] %s5400_s12 }
   0xe   :  { %5452 = sst [smem:[#allocation63_spill]] %s5401_s13 }
   0xf   :  { %5453 = sst [smem:[#allocation64_spill]] %s5402_s14 }
  0x10   :  { %5454 = sst [smem:[#allocation65_spill]] %s5403_s15 }
  0x11   :  { %5455 = sst [smem:[#allocation66_spill]] %s5404_s16 }
  0x12   :  { %5456 = sst [smem:[#allocation67_spill]] %s5405_s17 }
  0x13   :  { %5457 = sst [smem:[#allocation68_spill]] %s5406_s18 }
  0x14   :  { %23 = vsyncpa [#allocation4], 0 }
  0x15   :  { %25 = vsyncpa [#allocation4 + $0x1], 0 }
  0x16   :  { %26 = vsyncpa [#allocation7], 0 }
  0x17   :  { %28 = vsyncpa [#allocation7 + $0x1], 0 }
  0x18   :  { %29 = vsyncpa [#allocation10], 0 }
  0x19   :  { %31 = vsyncpa [#allocation10 + $0x1], 0 }
  0x1a   :  { %32 = vsyncpa [#allocation13], 0 }
  0x1b   :  { %34 = vsyncpa [#allocation13 + $0x1], 0 }
  0x1c   :  { %35 = vsyncpa [#allocation16], 0 }
  0x1d   :  { %37 = vsyncpa [#allocation16 + $0x1], 0 }
  0x1e   :  { %38 = vsyncpa [#allocation19], 0 }
  0x1f   :  { %40 = vsyncpa [#allocation19 + $0x1], 0 }
  0x20   :  { %41 = vsyncpa [#allocation22], 0 }
  0x21   :  { %42 = vsyncpa [#allocation5], 0 }
  0x22   :  { %44 = vsyncpa [#allocation5 + $0x1], 0  ;;  %s4628_s27 = smov 0   ;;  %s4630_s28 = smov 0  }
  0x23   :  { %s4632_s29 = smov 0   ;;  %s4634_s30 = smov 0  }
  0x24   :  { %s4636_s0 = smov 0   ;;  %s4638_s19 = smov 0  }
  0x25   :  { %s4640_s1 = smov 0   ;;  %s4642_s20 = smov 0  }
  0x26   :  { %s4644_s21 = smov 0   ;;  %s4646_s22 = smov 0  }
  0x27   :  { %s4648_s2 = smov 0  }
  0x28 LB: > { %5458 = sst [smem:[#allocation33_spill]] %s4468_s27  ;;  %s4682_s23 = sadd.s32 4294967295, %s4508_s2   ;;  %s4508_s2 = sphi %s4648_s2, %s50_s2   ;;  %s4504_s22 = sphi %s4646_s22, %s5545_s22   ;;  %s4500_s21 = sphi %s4644_s21, %s5544_s21   ;;  %s4496_s20 = sphi %s4642_s20, %s5543_s20   ;;  %s4492_s1 = sphi %s4640_s1, %s5542_s1   ;;  %s4488_s19 = sphi %s4638_s19, %s5541_s19   ;;  %s4484_s0 = sphi %s4636_s0, %s5540_s0   ;;  %s4480_s30 = sphi %s4634_s30, %s5539_s30   ;;  %s4476_s29 = sphi %s4632_s29, %s5547_s29   ;;  %s4472_s28 = sphi %s4630_s28, %s5546_s28   ;;  %s4468_s27 = sphi %s4628_s27, %s5538_s27  }
  0x29   : > { %5459 = sst [smem:[#allocation34_spill]] %s4472_s28  ;;  %s3264_s24 = sadd.s32 4294967294, %s4508_s2  }
  0x2a   : > { %5460 = sst [smem:[#allocation35_spill]] %s4484_s0  ;;  %p128_p0 = scmp.ne.s32.totalorder %s4488_s19, %s4484_s0 }
  0x2b   : > { %5461 = sst [smem:[#allocation36_spill]] %s4488_s19  ;;  %p129_p1 = scmp.eq.s32.totalorder %s4508_s2, 0 }
  0x2c   : > { %5462 = sst [smem:[#allocation37_spill]] %s4492_s1  ;;  %p134_p2 = scmp.ne.s32.totalorder %s4484_s0, %s4480_s30 }
  0x2d   : > { %5463 = sst [smem:[#allocation38_spill]] %s4496_s20  ;;  %p5410_p3 = scmp.eq.s32.totalorder %s4682_s23, 0 }
  0x2e   : > { %5464 = sst [smem:[#allocation39_spill]] %s4500_s21  ;;  %p4692_p4 = por %p129_p1, %p128_p0 }
  0x2f   : > { %5465 = sst [smem:[#allocation40_spill]] %s4504_s22  ;;  %p527_p5 = scmp.ne.s32.totalorder %s4476_s29, %s4472_s28 }
  0x30   : > { %5466 = sst [smem:[#allocation41_spill]] %s4508_s2  ;;  %p4700_p6 = por %p5410_p3, %p134_p2 }
  0x31   : > { %5467 = sst [smem:[#allocation42_spill]] %s4682_s23  ;;  %p528_p7 = scmp.eq.s32.totalorder %s4682_s23, 3 }
  0x32   : > { %s5469_s17 = scalar_select %p4700_p6, 1, 0 }
  0x33   : > { %p533_p8 = scmp.ne.s32.totalorder %s4472_s28, %s4468_s27  ;;  %p534_p9 = scmp.eq.s32.totalorder %s3264_s24, 3 }
  0x34   : > { %5470 = sst [smem:[#allocation43_spill]] %s5469_s17  ;;  %p4707_p10 = por %p528_p7, %p527_p5 }
  0x35   : > { %p3265_p11 = scmp.ge.s32.totalorder %s4508_s2, 1  ;;  %p4712_p12 = por %p534_p9, %p533_p8 }
  0x36   : > { %s5471_s30 = scalar_select %p4707_p10, 1, 0 }
  0x37   : > { %s5473_s26 = scalar_select %p4712_p12, 1, 0 }
  0x38   : > { %5472 = sst [smem:[#allocation44_spill]] %s5471_s30  ;;  %p541_p13 = scmp.lt.s32.totalorder %s4508_s2, 5 }
  0x39   : > { %5474 = sst [smem:[#allocation45_spill]] %s5473_s26  ;;  %s4510_s15 = smov [#allocation20]  }
  0x3a   : > { %p4717_p0 = pnand %p3265_p11, %p541_p13  ;;  %s553_s12 = sshll.u32 %s4510_s15, 4  ;;  %s554_s12 = int_to_ptr.vmem [resolvable:$true] %s553_s12 }
  0x3b   : > { %p3741_p2 = scmp.lt.s32.totalorder %s4508_s2, 4  ;;  %s4731_s26 = sand.u32 1, %s4488_s19  }
  0x3c   : > { %s5475_s25 = scalar_select %p4717_p0, 1, 0 }
  0x3d   : > { %p3697_p1 = pneg %p4717_p0  ;;  %p4735_p7 = pnand %p3741_p2, %p4692_p4 }
  0x3e   : > { %5476 = sst [smem:[#allocation46_spill]] %s5475_s25  ;;  %s4039_s15 = scalar_lea.vmem %s554_s12, 1024 }
  0x3f   : > { %p4726_p5 = pnand %p3697_p1, %p5410_p3  ;;  %p4040_p9 = scmp.ne.s32.totalorder %s554_s12, %s4039_s15 }
  0x40   : > { %p4047_p1 = scmp.lt.s32.totalorder %s554_s12, %s554_s12  ;;  %p4048_p3 = scmp.lt.s32.totalorder %s4039_s15, %s4039_s15 }
  0x41   : > { %p4030_p8 = pneg %p4726_p5 }
  0x42   : > { %p4049_p12 = por %p4048_p3, %p4047_p1 }
  0x43   : > { %p4042_p11 = pnand %p4040_p9, %p4030_p8 }
  0x45   : > { %p4043_p13 = pneg %p4042_p11 }
  0x47   : > { %p4050_p10 = pnand %p4049_p12, %p4043_p13 }
  0x49   : > { %4053 = shalt.err (!%p4050_p10)
}
  0x4a   : > { %s5422_s30 = smov 64   ;;  %s5424_s18 = smov 4  }
  0x4b   : > { %s5479_s14 = sld [smem:[#allocation64_spill]]  ;;  %s62_s15 = sadd.s32 1, %s4504_s22 }
  0x4c   : > { %s59_s20 = sadd.s32 1, %s4500_s21  ;;  %s4755_s28 = sand.u32 1, %s4508_s2  }
  0x4d   : > { %p60_p3 = scmp.ge.s32.totalorder %s59_s20, 2  ;;  %s3663_s23 = smul.u32 3, %s4731_s26 }
  0x4e   : > { %s3664_s8 = smul.u32 48, %s4500_s21  ;;  %s5484_s3 = sld [smem:[#allocation53_spill]] }
  0x4f   : > { %s5549_s20 = smov (%p60_p3, %s59_s20), 0  ;;  %s5551_s15 = smov (!%p60_p3, %s62_s15), %s4504_s22 }
  0x50   : > { %5480 = sst [smem:[#allocation47_spill]] %s5549_s20  ;;  %s118_s17 = ssub.s32 %s4500_s21, %s5549_s20 }
  0x51   : > { %3700 = dma.hbm_to_vmem [thread:$0]  (!%p4726_p5), %s5479_s14, 1024, %s554_s12, [#allocation19], %s5422_s30, %s5422_s30, %s5424_s18  }
  0x52   : > { %p64_p4 = scmp.ge.s32.totalorder %s5551_s15, 2  ;;  %p119_p10 = scmp.eq.s32.totalorder %s118_s17, 0 }
  0x53   : > { %s628_s1 = scalar_lea.vmem [#allocation6], %s3663_s23  ;;  %s5482_s12 = sadd.s32 1, %s4488_s19 }
  0x54   : > { %s636_s0 = sshll.u32 %s628_s1, 4  ;;  %s5553_s15 = smov (%p64_p4, %s5551_s15), 0  ;;  %s637_s0 = int_to_ptr.vmem [resolvable:$true] %s636_s0 }
  0x55   : > { %5481 = sst [smem:[#allocation48_spill]] %s5553_s15  ;;  %s514_s18 = ssub.s32 %s4504_s22, %s5553_s15 }
  0x56   : > { %s4769_s30 = scalar_select %p119_p10, %s4488_s19, %s5482_s12  }
  0x57   : > { %s634_s25 = scalar_lea.hbm %s5484_s3, %s3664_s8  ;;  %p4776_p12 = scmp.eq.s32.totalorder %s514_s18, 0 }
  0x58   : > { %5483 = sst [smem:[#allocation49_spill]] %s4769_s30  ;;  %s5432_s17 = scalar_lea.sflag [#allocation7], %s4755_s28 }
  0x59   : > { %p4783_p2 = pneg %p4735_p7  ;;  %s4067_s1 = scalar_lea.vmem %s637_s0, 48 }
  0x5a   : > { %p4068_p9 = scmp.ne.s32.totalorder %s637_s0, %s4067_s1  ;;  %s4513_s12 = smov [#allocation6]  }
  0x5b   : > { %s4072_s14 = sshll.u32 %s4513_s12, 4  ;;  %s4073_s14 = int_to_ptr.vmem [resolvable:$false] %s4072_s14 }
  0x5c   : > { %p4070_p11 = pnand %p4068_p9, %p4783_p2  ;;  %s4074_s2 = scalar_lea.vmem %s4073_s14, 96 }
  0x5d   : > { %p4075_p1 = scmp.lt.s32.totalorder %s637_s0, %s4073_s14  ;;  %p4076_p3 = scmp.lt.s32.totalorder %s4074_s2, %s4067_s1 }
  0x5e   : > { %p4071_p13 = pneg %p4070_p11 }
  0x5f   : > { %p4077_p4 = por %p4076_p3, %p4075_p1 }
  0x61   : > { %p4078_p10 = pnand %p4077_p4, %p4071_p13 }
  0x63   : > { %4081 = shalt.err (!%p4078_p10)
}
  0x64   : > { %3710 = dma.hbm_to_vmem [thread:$0]  (!%p4735_p7), %s634_s25, 48, %s637_s0, %s5432_s17  }
  0x65   : > { %s5487_s18 = sadd.s32 1, %s4476_s29  ;;  %s4801_s1 = sshll.u32 %s4500_s21, 4 }
  0x66   : > { %s4798_s8 = scalar_select %p4776_p12, %s4476_s29, %s5487_s18  }
  0x67   : > { %s5488_s5 = sld [smem:[#allocation55_spill]]  ;;  %s667_s3 = scalar_lea.vmem [#allocation9], %s4731_s26 }
  0x68   : > { %s674_s15 = sshll.u32 %s667_s3, 4  ;;  %s5433_s20 = scalar_lea.sflag [#allocation10], %s4755_s28  ;;  %s675_s15 = int_to_ptr.vmem [resolvable:$true] %s674_s15 }
  0x69   : > { %s4095_s22 = scalar_lea.vmem %s675_s15, 16  ;;  %s4514_s0 = smov [#allocation9]  }
  0x6a   : > { %p4096_p9 = scmp.ne.s32.totalorder %s675_s15, %s4095_s22  ;;  %s4100_s13 = sshll.u32 %s4514_s0, 4  ;;  %s4101_s13 = int_to_ptr.vmem [resolvable:$false] %s4100_s13 }
  0x6b   : > { %s4102_s25 = scalar_lea.vmem %s4101_s13, 32  ;;  %p4103_p12 = scmp.lt.s32.totalorder %s675_s15, %s4101_s13 }
  0x6c   : > { %p4098_p11 = pnand %p4096_p9, %p4783_p2  ;;  %p4104_p1 = scmp.lt.s32.totalorder %s4102_s25, %s4095_s22 }
  0x6d   : > { %s672_s2 = scalar_lea.hbm %s5488_s5, %s4801_s1 }
  0x6e   : > { %p4099_p13 = pneg %p4098_p11  ;;  %p4105_p3 = por %p4104_p1, %p4103_p12 }
  0x70   : > { %p4106_p4 = pnand %p4105_p3, %p4099_p13 }
  0x72   : > { %4109 = shalt.err (!%p4106_p4)
}
  0x73   : > { %3716 = dma.hbm_to_vmem [thread:$0]  (!%p4735_p7), %s672_s2, 16, %s675_s15, %s5433_s20  }
  0x74   : > { %s5489_s7 = sld [smem:[#allocation57_spill]]  ;;  %s701_s14 = scalar_lea.vmem [#allocation12], %s4731_s26 }
  0x75   : > { %s708_s0 = sshll.u32 %s701_s14, 4  ;;  %s3280_s22 = sshll.u32 %s4731_s26, 8  ;;  %s709_s0 = int_to_ptr.vmem [resolvable:$true] %s708_s0 }
  0x76   : > { %s5435_s13 = scalar_lea.sflag [#allocation13], %s4755_s28  ;;  %s4123_s25 = scalar_lea.vmem %s709_s0, 16 }
  0x77   : > { %p4124_p10 = scmp.ne.s32.totalorder %s709_s0, %s4123_s25  ;;  %s4515_s17 = smov [#allocation12]  }
  0x78   : > { %s4128_s5 = sshll.u32 %s4515_s17, 4  ;;  %s4129_s5 = int_to_ptr.vmem [resolvable:$false] %s4128_s5 }
  0x79   : > { %p4126_p9 = pnand %p4124_p10, %p4783_p2  ;;  %s4130_s30 = scalar_lea.vmem %s4129_s5, 32 }
  0x7a   : > { %s706_s12 = scalar_lea.hbm %s5489_s7, %s4801_s1  ;;  %p4131_p13 = scmp.lt.s32.totalorder %s709_s0, %s4129_s5 }
  0x7b   : > { %p4127_p11 = pneg %p4126_p9  ;;  %p4132_p12 = scmp.lt.s32.totalorder %s4130_s30, %s4123_s25 }
  0x7d   : > { %p4133_p1 = por %p4132_p12, %p4131_p13 }
  0x7f   : > { %p4134_p3 = pnand %p4133_p1, %p4127_p11 }
  0x81   : > { %4137 = shalt.err (!%p4134_p3)
}
  0x82   : > { %3722 = dma.hbm_to_vmem [thread:$0]  (!%p4735_p7), %s706_s12, 16, %s709_s0, %s5435_s13  }
  0x83   : > { %s3435_s15 = sshll.u32 %s4500_s21, 12  ;;  %s5490_s10 = sld [smem:[#allocation60_spill]] }
  0x84   : > { %s746_s18 = scalar_lea.vmem [#allocation15], %s3280_s22  ;;  %s5434_s5 = scalar_lea.sflag [#allocation16], %s4755_s28 }
  0x85   : > { %s753_s14 = sshll.u32 %s746_s18, 4  ;;  %s4516_s25 = smov [#allocation15]   ;;  %s754_s14 = int_to_ptr.vmem [resolvable:$true] %s753_s14 }
  0x86   : > { %s4151_s30 = scalar_lea.vmem %s754_s14, 4096  ;;  %s4156_s20 = sshll.u32 %s4516_s25, 4  ;;  %s4157_s20 = int_to_ptr.vmem [resolvable:$false] %s4156_s20 }
  0x87   : > { %p4152_p4 = scmp.ne.s32.totalorder %s754_s14, %s4151_s30  ;;  %s4158_s7 = scalar_lea.vmem %s4157_s20, 8192 }
  0x88   : > { %p4159_p11 = scmp.lt.s32.totalorder %s754_s14, %s4157_s20  ;;  %p4160_p13 = scmp.lt.s32.totalorder %s4158_s7, %s4151_s30 }
  0x89   : > { %s752_s17 = scalar_lea.hbm %s5490_s10, %s3435_s15  ;;  %p4154_p10 = pnand %p4152_p4, %p4783_p2 }
  0x8a   : > { %p4161_p12 = por %p4160_p13, %p4159_p11 }
  0x8b   : > { %p4155_p9 = pneg %p4154_p10 }
  0x8d   : > { %p4162_p1 = pnand %p4161_p12, %p4155_p9 }
  0x8f   : > { %4165 = shalt.err (!%p4162_p1)
}
  0x90   : > { %s5491_s12 = smov 4   ;;  %s5492_s0 = smov 64  }
  0x91   : > { %3728 = dma.hbm_to_vmem [thread:$0]  (!%p4735_p7), %s752_s17, 4096, %s754_s14, %s5434_s5, %s5492_s0, %s5492_s0, %s5491_s12  }
  0x92   : > { %s4517_s22 = smov [#allocation21]   ;;  %s3661_s2 = smul.u32 192, %s4731_s26 }
  0x93   : > { %s569_s15 = sshll.u32 %s4517_s22, 4  ;;  %s570_s15 = int_to_ptr.vmem [resolvable:$true] %s569_s15 }
  0x94   : > { %s4177_s3 = scalar_lea.vmem %s570_s15, 1024  ;;  %p4185_p9 = scmp.lt.s32.totalorder %s570_s15, %s570_s15 }
  0x95   : > { %p4178_p3 = scmp.ne.s32.totalorder %s570_s15, %s4177_s3  ;;  %p4186_p11 = scmp.lt.s32.totalorder %s4177_s3, %s4177_s3 }
  0x97   : > { %p4180_p4 = pnand %p4178_p3, %p4030_p8  ;;  %p4187_p13 = por %p4186_p11, %p4185_p9 }
  0x99   : > { %p4181_p10 = pneg %p4180_p4 }
  0x9b   : > { %p4188_p12 = pnand %p4187_p13, %p4181_p10 }
  0x9d   : > { %4191 = shalt.err (!%p4188_p12)
}
  0x9e   : > { %s5493_s16 = sld [smem:[#allocation66_spill]]  ;;  %s3662_s17 = smul.u32 3072, %s4500_s21 }
  0x9f   : > { %s607_s18 = scalar_lea.vmem [#allocation3], %s3661_s2  ;;  %s5494_s22 = sld [smem:[#allocation52_spill]] }
  0xa0   : > { %s614_s14 = sshll.u32 %s607_s18, 4  ;;  %s3271_s24 = sshll.u32 %s4731_s26, 6  ;;  %s615_s14 = int_to_ptr.vmem [resolvable:$true] %s614_s14 }
  0xa1   : > { %s604_s5 = scalar_lea.sflag [#allocation4], %s4731_s26  ;;  %s4205_s13 = scalar_lea.vmem %s615_s14, 3072 }
  0xa2   : > { %p4206_p8 = scmp.ne.s32.totalorder %s615_s14, %s4205_s13  ;;  %s4518_s7 = smov [#allocation3]  }
  0xa3   : > { %s4210_s20 = sshll.u32 %s4518_s7, 4  ;;  %s4211_s20 = int_to_ptr.vmem [resolvable:$false] %s4210_s20 }
  0xa4   : > { %3703 = dma.hbm_to_vmem [thread:$0]  (!%p4726_p5), %s5493_s16, 1024, %s570_s15, [#allocation22], %s5492_s0, %s5492_s0, %s5491_s12  }
  0xa5   : > { %s613_s3 = scalar_lea.hbm %s5494_s22, %s3662_s17  ;;  %p4208_p1 = pnand %p4206_p8, %p4783_p2 }
  0xa6   : > { %s4212_s10 = scalar_lea.vmem %s4211_s20, 6144  ;;  %p4213_p5 = scmp.lt.s32.totalorder %s615_s14, %s4211_s20 }
  0xa7   : > { %p4209_p3 = pneg %p4208_p1  ;;  %p4214_p4 = scmp.lt.s32.totalorder %s4212_s10, %s4205_s13 }
  0xa9   : > { %p4215_p10 = por %p4214_p4, %p4213_p5 }
  0xab   : > { %p4216_p9 = pnand %p4215_p10, %p4209_p3 }
  0xad   : > { %4219 = shalt.err (!%p4216_p9)
}
  0xae   : > { %s4519_s15 = smov 192   ;;  %s4520_s2 = smov 12  }
  0xaf   : > { %3707 = dma.hbm_to_vmem [thread:$0]  (!%p4735_p7), %s613_s3, 3072, %s615_s14, %s604_s5, %s4519_s15, %s4519_s15, %s4520_s2  }
  0xb0   : > { %s3433_s17 = sshll.u32 %s4500_s21, 10  ;;  %s5495_s4 = sld [smem:[#allocation54_spill]] }
  0xb1   : > { %s647_s22 = scalar_lea.vmem [#allocation8], %s3271_s24  ;;  %s4521_s10 = smov [#allocation8]  }
  0xb2   : > { %s654_s7 = sshll.u32 %s647_s22, 4  ;;  %s4238_s13 = sshll.u32 %s4521_s10, 4  ;;  %s655_s7 = int_to_ptr.vmem [resolvable:$true] %s654_s7  ;;  %s4239_s13 = int_to_ptr.vmem [resolvable:$false] %s4238_s13 }
  0xb3   : > { %s4233_s20 = scalar_lea.vmem %s655_s7, 1024  ;;  %s4240_s16 = scalar_lea.vmem %s4239_s13, 2048 }
  0xb4   : > { %p4234_p11 = scmp.ne.s32.totalorder %s655_s7, %s4233_s20  ;;  %p4241_p8 = scmp.lt.s32.totalorder %s655_s7, %s4239_s13 }
  0xb5   : > { %p4242_p1 = scmp.lt.s32.totalorder %s4240_s16, %s4233_s20 }
  0xb6   : > { %s653_s25 = scalar_lea.hbm %s5495_s4, %s3433_s17  ;;  %p4236_p13 = pnand %p4234_p11, %p4783_p2 }
  0xb7   : > { %p4243_p3 = por %p4242_p1, %p4241_p8 }
  0xb8   : > { %p4237_p12 = pneg %p4236_p13 }
  0xba   : > { %p4244_p5 = pnand %p4243_p3, %p4237_p12 }
  0xbc   : > { %4247 = shalt.err (!%p4244_p5)
}
  0xbd   : > { %s5496_s5 = scalar_lea.sflag [#allocation7], %s4755_s28  ;;  %s5497_s6 = sld [smem:[#allocation56_spill]] }
  0xbe   : > { %3713 = dma.hbm_to_vmem [thread:$0]  (!%p4735_p7), %s653_s25, 1024, %s655_s7, %s5496_s5, %s5492_s0, %s5492_s0, %s5491_s12  }
  0xbf   : > { %s684_s16 = scalar_lea.vmem [#allocation11], %s4731_s26  ;;  %s3277_s2 = sshll.u32 %s4731_s26, 2 }
  0xc0   : > { %s691_s15 = sshll.u32 %s684_s16, 4  ;;  %s4522_s18 = smov [#allocation11]   ;;  %s692_s15 = int_to_ptr.vmem [resolvable:$true] %s691_s15 }
  0xc1   : > { %s4261_s17 = scalar_lea.vmem %s692_s15, 16  ;;  %s4266_s30 = sshll.u32 %s4522_s18, 4  ;;  %s4267_s30 = int_to_ptr.vmem [resolvable:$false] %s4266_s30 }
  0xc2   : > { %p4262_p4 = scmp.ne.s32.totalorder %s692_s15, %s4261_s17  ;;  %s4268_s22 = scalar_lea.vmem %s4267_s30, 32 }
  0xc3   : > { %s689_s24 = scalar_lea.hbm %s5497_s6, %s4801_s1  ;;  %p4269_p11 = scmp.lt.s32.totalorder %s692_s15, %s4267_s30 }
  0xc4   : > { %p4264_p10 = pnand %p4262_p4, %p4783_p2  ;;  %p4270_p13 = scmp.lt.s32.totalorder %s4268_s22, %s4261_s17 }
  0xc6   : > { %p4265_p9 = pneg %p4264_p10  ;;  %p4271_p12 = por %p4270_p13, %p4269_p11 }
  0xc8   : > { %p4272_p8 = pnand %p4271_p12, %p4265_p9 }
  0xca   : > { %4275 = shalt.err (!%p4272_p8)
}
  0xcb   : > { %s5498_s12 = scalar_lea.sflag [#allocation10], %s4755_s28  ;;  %s3434_s0 = sshll.u32 %s4500_s21, 6 }
  0xcc   : > { %3719 = dma.hbm_to_vmem [thread:$0]  (!%p4735_p7), %s689_s24, 16, %s692_s15, %s5498_s12  }
  0xcd   : > { %s5499_s9 = sld [smem:[#allocation59_spill]]  ;;  %s727_s10 = scalar_lea.vmem [#allocation14], %s3277_s2 }
  0xce   : > { %s735_s13 = sshll.u32 %s727_s10, 4  ;;  %s4523_s14 = smov [#allocation14]   ;;  %s736_s13 = int_to_ptr.vmem [resolvable:$true] %s735_s13 }
  0xcf   : > { %s4289_s5 = scalar_lea.vmem %s736_s13, 64  ;;  %s4294_s3 = sshll.u32 %s4523_s14, 4  ;;  %s4295_s3 = int_to_ptr.vmem [resolvable:$false] %s4294_s3 }
  0xd0   : > { %p4290_p1 = scmp.ne.s32.totalorder %s736_s13, %s4289_s5  ;;  %s4296_s16 = scalar_lea.vmem %s4295_s3, 128 }
  0xd1   : > { %p4297_p4 = scmp.lt.s32.totalorder %s736_s13, %s4295_s3  ;;  %p4298_p10 = scmp.lt.s32.totalorder %s4296_s16, %s4289_s5 }
  0xd2   : > { %p4292_p3 = pnand %p4290_p1, %p4783_p2 }
  0xd3   : > { %s733_s20 = scalar_lea.hbm %s5499_s9, %s3434_s0  ;;  %p4299_p9 = por %p4298_p10, %p4297_p4 }
  0xd4   : > { %p4293_p5 = pneg %p4292_p3 }
  0xd6   : > { %p4300_p11 = pnand %p4299_p9, %p4293_p5 }
  0xd8   : > { %4303 = shalt.err (!%p4300_p11)
}
  0xd9   : > { %s5500_s24 = scalar_lea.sflag [#allocation13], %s4755_s28  ;;  %s5501_s11 = sld [smem:[#allocation61_spill]] }
  0xda   : > { %3725 = dma.hbm_to_vmem [thread:$0]  (!%p4735_p7), %s733_s20, 64, %s736_s13, %s5500_s24  }
  0xdb   : > { %s766_s18 = scalar_lea.vmem [#allocation17], %s4731_s26  ;;  %s4524_s12 = smov [#allocation17]  }
  0xdc   : > { %s773_s30 = sshll.u32 %s766_s18, 4  ;;  %s4322_s0 = sshll.u32 %s4524_s12, 4  ;;  %s774_s30 = int_to_ptr.vmem [resolvable:$true] %s773_s30  ;;  %s4323_s0 = int_to_ptr.vmem [resolvable:$false] %s4322_s0 }
  0xdd   : > { %s4317_s22 = scalar_lea.vmem %s774_s30, 16  ;;  %s4324_s25 = scalar_lea.vmem %s4323_s0, 32 }
  0xde   : > { %p4318_p13 = scmp.ne.s32.totalorder %s774_s30, %s4317_s22  ;;  %p4325_p1 = scmp.lt.s32.totalorder %s774_s30, %s4323_s0 }
  0xdf   : > { %s771_s17 = scalar_lea.hbm %s5501_s11, %s4801_s1  ;;  %p4326_p3 = scmp.lt.s32.totalorder %s4324_s25, %s4317_s22 }
  0xe0   : > { %p4320_p12 = pnand %p4318_p13, %p4783_p2 }
  0xe1   : > { %p4327_p5 = por %p4326_p3, %p4325_p1 }
  0xe2   : > { %p4321_p8 = pneg %p4320_p12 }
  0xe4   : > { %p4328_p4 = pnand %p4327_p5, %p4321_p8 }
  0xe6   : > { %4331 = shalt.err (!%p4328_p4)
}
  0xe7   : > { %s5502_s7 = scalar_lea.sflag [#allocation16], %s4755_s28  ;;  %s5503_s13 = sld [smem:[#allocation63_spill]] }
  0xe8   : > { %3731 = dma.hbm_to_vmem [thread:$0]  (!%p4735_p7), %s771_s17, 16, %s774_s30, %s5502_s7  }
  0xe9   : > { %s789_s14 = scalar_lea.vmem [#allocation18], %s4731_s26  ;;  %s787_s16 = scalar_lea.sflag [#allocation19], %s4755_s28 }
  0xea   : > { %s796_s3 = sshll.u32 %s789_s14, 4  ;;  %s4525_s15 = smov [#allocation18]   ;;  %s797_s3 = int_to_ptr.vmem [resolvable:$true] %s796_s3 }
  0xeb   : > { %s4345_s24 = scalar_lea.vmem %s797_s3, 16  ;;  %s4350_s2 = sshll.u32 %s4525_s15, 4  ;;  %s4351_s2 = int_to_ptr.vmem [resolvable:$false] %s4350_s2 }
  0xec   : > { %p4346_p10 = scmp.ne.s32.totalorder %s797_s3, %s4345_s24  ;;  %s4352_s18 = scalar_lea.vmem %s4351_s2, 32 }
  0xed   : > { %s794_s5 = scalar_lea.hbm %s5503_s13, %s4801_s1  ;;  %p4353_p13 = scmp.lt.s32.totalorder %s797_s3, %s4351_s2 }
  0xee   : > { %p4348_p9 = pnand %p4346_p10, %p4783_p2  ;;  %p4354_p12 = scmp.lt.s32.totalorder %s4352_s18, %s4345_s24 }
  0xf0   : > { %p4349_p11 = pneg %p4348_p9  ;;  %p4355_p8 = por %p4354_p12, %p4353_p13 }
  0xf2   : > { %p4356_p1 = pnand %p4355_p8, %p4349_p11 }
  0xf4   : > { %4359 = shalt.err (!%p4356_p1)
}
  0xf5   : > { %3734 = dma.hbm_to_vmem [thread:$0]  (!%p4735_p7), %s794_s5, 16, %s797_s3, %s787_s16  }
  0xf6   : > { %805 = sbr.rel (%p4717_p0) target bundleno = 3668 (0xe54), region = 92  ;;  %s5505_s28 = sld [smem:[#allocation35_spill]] (!%p4717_p0) }
  0xfc   : > { %s4923_s23 = sand.u32 1, %s5505_s28  }
  0xfd   : > { %s3665_s17 = smul.u32 192, %s4923_s23  ;;  %s808_s30 = scalar_lea.sflag [#allocation4], %s4923_s23 }
  0xff   : > { %s4927_s22 = scalar_lea.vmem [#allocation3], %s3665_s17 }
 0x100   : > { %4431 = dma.done.wait (%p4700_p6), %s808_s30, 3072  }
 0x101   : > { %4433 = vsyncadd (%p4700_p6), %s808_s30, 4294964224  ;;  %s5507_s27 = sld [smem:[#allocation42_spill]]  ;;  %s3666_s0 = smul.u32 3, %s4923_s23 }
 0x103   : > { %s4935_s7 = scalar_lea.vmem [#allocation6], %s3666_s0 }
 0x107   : > { %s816_s12 = sand.u32 1, %s5507_s27  }
 0x108   : > { %s817_s25 = scalar_lea.sflag [#allocation7], %s816_s12 }
 0x109   : > { %4435 = dma.done.wait (%p4700_p6), %s817_s25, 1072  }
 0x10a   : > { %4437 = vsyncadd (%p4700_p6), %s817_s25, 4294966224  ;;  %s3286_s20 = sshll.u32 %s4923_s23, 6  ;;  %s835_s13 = scalar_lea.sflag [#allocation10], %s816_s12 }
 0x10b   : > { %s4942_s10 = scalar_lea.vmem [#allocation8], %s3286_s20 }
 0x10c   : > { %4439 = dma.done.wait (%p4700_p6), %s835_s13, 32  }
 0x10d   : > { %4441 = vsyncadd (%p4700_p6), %s835_s13, 4294967264  ;;  %s851_s3 = scalar_lea.sflag [#allocation13], %s816_s12 }
 0x10e   : > { %4443 = dma.done.wait (%p4700_p6), %s851_s3, 80  }
 0x10f   : > { %4445 = vsyncadd (%p4700_p6), %s851_s3, 4294967216  ;;  %s3287_s24 = sshll.u32 %s4923_s23, 2  ;;  %s3288_s15 = sshll.u32 %s4923_s23, 8 }
 0x110   : > { %s4957_s2 = scalar_lea.vmem [#allocation14], %s3287_s24  ;;  %s868_s18 = scalar_lea.sflag [#allocation16], %s816_s12 }
 0x111   : > { %s4959_s26 = scalar_lea.vmem [#allocation15], %s3288_s15 }
 0x112   : > { %4447 = dma.done.wait (%p4700_p6), %s868_s18, 4112  }
 0x113   : > { %4449 = vsyncadd (%p4700_p6), %s868_s18, 4294963184  ;;  %s885_s17 = scalar_lea.sflag [#allocation19], %s816_s12 }
 0x114   : > { %4451 = dma.done.wait (%p4700_p6), %s885_s17, 16  }
 0x115   : > { %4453 = vsyncadd (%p4700_p6), %s885_s17, 4294967280  ;;  %p5508_p0 = scmp.eq.s32.totalorder %s5507_s27, 0 }
 0x117   : > { %4455 = dma.done.wait (%p5508_p0), [#allocation19], 1024   ;;  %p5509_p7 = pmov %p5508_p0 }
 0x118   : > { %p5510_p2 = pmov %p5508_p0 }
 0x119   : > { %4457 = vsyncadd (%p5509_p7), [#allocation19], 4294966272 }
 0x11a   : > { %4459 = dma.done.wait (%p5510_p2), [#allocation22], 1024   ;;  %p5511_p3 = pmov %p5508_p0 }
 0x11b   : > { %s5512_s0 = sld [smem:[#allocation34_spill]] }
 0x11c   : > { %4461 = vsyncadd (%p5511_p3), [#allocation22], 4294966272  ;;  %s5513_s12 = sld [smem:[#allocation38_spill]] }
 0x11d   : > { %s5514_s25 = sld [smem:[#allocation37_spill]] }
 0x11e   : > { %s5515_s18 = sld [smem:[#allocation51_spill]] }
 0x11f   : > { %s5517_s5 = sld [smem:[#allocation58_spill]] }
 0x120   : > { %s5518_s11 = sld [smem:[#allocation62_spill]] }
 0x121   : > { %s5436_s20 = sand.u32 1, %s5512_s0  }
 0x122   : > { %s3292_s1 = sshll.u32 %s5513_s12, 1  ;;  %s4983_s13 = sshll.u32 %s5436_s20, 1 }
 0x123   : > { %p1006_p6 = scmp.lt.s32.totalorder %s3292_s1, 3  ;;  %p1016_p5 = scmp.lt.s32.totalorder %s5514_s25, 1 }
 0x124   : > { %s5516_s12 = sld [smem:[#allocation50_spill]]  ;;  %s1004_s19 = scalar_lea.vmem [#allocation23], %s4983_s13 }
 0x125   : > { %s5555_s1 = smov (!%p1006_p6, %s3292_s1), 3  ;;  %p3297_p4 = scmp.ne.s32.totalorder %s5514_s25, 0 }
 0x126   : > { %s4987_s3 = scalar_select %p1016_p5, %s5514_s25, 1 }
 0x127   : > { %s3293_s27 = sshll.u32 %s5555_s1, 3  ;;  %s4992_s17 = scalar_lea.vmem %s5515_s18, %s5555_s1 }
 0x128   : > { %s3436_s20 = sshll.u32 %s4987_s3, 8  ;;  %s1023_s21 = scalar_lea.vmem %s5518_s11, %s4987_s3 }
 0x129   : > { %s5001_s4 = scalar_lea.vmem %s5517_s5, %s3436_s20  ;;  %1028 = sbr.rel (%p3297_p4) target bundleno = 304 (0x130), region = 144 }
 0x12a   : > { %s1009_s0 = scalar_lea.vmem %s5516_s12, %s3293_s27 }
 0x12e   : > { %v1029_v0 = vld [vmem:[%s1009_s0] sm:$0xff]  ;;  %v1030_v1 = vld [vmem:[%s1009_s0 + $0x8] sm:$0xff] }
 0x12f   : > { %1031 = vst [vmem:[#allocation2] sm:$0xff] %v1029_v0  ;;  %1032 = vst [vmem:[#allocation2 + $0x8] sm:$0xff] %v1030_v1 }
 0x130 PF: > { %v3850_v2 = vld [vmem:[%s4927_s22 + $0xac] ss:$12 sps:$4 sm:$0xff]   ;;  %v3852_v3 = vld [vmem:[%s4927_s22 + $0xa8] ss:$12 sps:$4 sm:$0xff]   ;;  %v4526_v4 = vmov 0   ;;  %v4527_v5 = vmov 0.0   ;;  %v1070_v31 = vlaneseq }
 0x131   : > { %1245 = vmatprep.mubr.bf16.mxu0 %v4526_v4  ;;  %3533 = vmatprep.subr.bf16.mxu1 %v4527_v5  ;;  %v3853_v6 = vld [vmem:[%s4927_s22 + $0x94] ss:$12 sps:$4 sm:$0xff]   ;;  %v3855_v7 = vld [vmem:[%s4927_s22 + $0x90] ss:$12 sps:$4 sm:$0xff]   ;;  %v3858_v9 = vld [vmem:[%s4927_s22 + $0x78] ss:$12 sps:$4 sm:$0xff]  }
 0x132   : > { %1213 = vmatprep.subr.bf16.mxu0 %v3850_v2  ;;  %v3856_v8 = vld [vmem:[%s4927_s22 + $0x7c] ss:$12 sps:$4 sm:$0xff]   ;;  %v3859_v10 = vld [vmem:[%s4927_s22 + $0x64] ss:$12 sps:$4 sm:$0xff]   ;;  %v3861_v11 = vld [vmem:[%s4927_s22 + $0x60] ss:$12 sps:$4 sm:$0xff]  }
 0x133   : > { %1214 = vmatpush1.bf16.msra.mxu0 %v3852_v3  ;;  %v3862_v12 = vld [vmem:[%s4927_s22 + $0x4c] ss:$12 sps:$4 sm:$0xff]   ;;  %v3874_v13 = vld [vmem:[%s4927_s22 + $0xb0] ss:$12 sps:$4 sm:$0xff]   ;;  %v3864_v15 = vld [vmem:[%s4927_s22 + $0x48] ss:$12 sps:$4 sm:$0xff]  }
 0x134   : > { %1215 = vmatprep.subr.bf16.mxu0 %v3853_v6  ;;  %3534 = vmatpush3.bf16.msra.mxu1 %v3874_v13  ;;  %v3875_v14 = vld [vmem:[%s4927_s22 + $0x98] ss:$12 sps:$4 sm:$0xff]   ;;  %v3865_v16 = vld [vmem:[%s4927_s22 + $0x34] ss:$12 sps:$4 sm:$0xff]   ;;  %v3867_v18 = vld [vmem:[%s4927_s22 + $0x30] ss:$12 sps:$4 sm:$0xff]  }
 0x135   : > { %3535 = vmatprep.subr.bf16.mxu1 %v4527_v5  ;;  %v3876_v17 = vld [vmem:[%s4927_s22 + $0x80] ss:$12 sps:$4 sm:$0xff]   ;;  %v3868_v19 = vld [vmem:[%s4927_s22 + $0x1c] ss:$12 sps:$4 sm:$0xff]   ;;  %v3870_v21 = vld [vmem:[%s4927_s22 + $0x18] ss:$12 sps:$4 sm:$0xff]  }
 0x136   : > { %v3877_v20 = vld [vmem:[%s4927_s22 + $0x68] ss:$12 sps:$4 sm:$0xff]   ;;  %v3871_v22 = vld [vmem:[%s4927_s22 + $0x4] ss:$12 sps:$4 sm:$0xff]   ;;  %v3873_v24 = vld [vmem:[%s4927_s22] ss:$12 sps:$4 sm:$0xff]  }
 0x137   : > { %1216 = vmatpush1.bf16.msra.mxu0 %v3855_v7  ;;  %v3878_v23 = vld [vmem:[%s4927_s22 + $0x50] ss:$12 sps:$4 sm:$0xff]   ;;  %v3879_v27 = vld [vmem:[%s4927_s22 + $0x38] ss:$12 sps:$4 sm:$0xff]   ;;  %v3880_v29 = vld [vmem:[%s4927_s22 + $0x20] ss:$12 sps:$4 sm:$0xff]  }
 0x138   : > { %1217 = vmatprep.subr.bf16.mxu0 %v3856_v8  ;;  %3536 = vmatpush3.bf16.msra.mxu1 %v3875_v14  ;;  %v5035_v25 = vld [vmem:[#allocation2] sm:$0xff]  ;;  %v5037_v26 = vld [vmem:[#allocation2 + $0x8] sm:$0xff]  ;;  %vm4528_vm0 = vmmov 0   ;;  %v5056_v32 = vshrl.u32 %v1070_v31, 7  ;;  %v1068_v34 = vld [vmem:[%s4935_s7] sm:$0x7] }
 0x139   : > { %3537 = vmatprep.subr.bf16.mxu1 %v4527_v5  ;;  %v1035_v28 = vpack.c.bf16 %v5037_v26, %v5035_v25  ;;  %v3881_v30 = vld [vmem:[%s4927_s22 + $0x8] ss:$12 sps:$4 sm:$0xff]   ;;  %3549 = vmatprep.mubr.msk.bf16.mxu1 %vm4528_vm0, %v4527_v5  ;;  %vm1317_vm1 = vcmask 523264   ;;  %vm1438_vm2 = vcmask 1043456   ;;  %v5084_v62 = vld [vmem:[%s4992_s17] ss:$0 sm:$0xff] }
 0x13a   : > { %v1076_v33 = vsub.s32 1, %v5056_v32  ;;  %v1072_v37 = vsub.s32 0, %v5056_v32  ;;  %v1080_v52 = vsub.s32 2, %v5056_v32  ;;  %vm1410_vm3 = vcmask 64512   ;;  %v5089_v7 = vld [vmem:[%s4992_s17 + $0x1] ss:$0 sm:$0xff] }
 0x13b   : > { %1218 = vmatpush1.bf16.msra.mxu0 %v3858_v9  ;;  %s4529_s6 = smov 64   ;;  %s5519_s9 = scalar_lea.vmem [#allocation9], %s4923_s23 }
 0x13c   : > { %1219 = vmatprep.subr.bf16.mxu0 %v3859_v10  ;;  %3538 = vmatpush3.bf16.msra.mxu1 %v3876_v17  ;;  %v1077_v35 = vrot.slane %v1068_v34, %v1076_v33  ;;  %v1073_v41 = vrot.slane %v1068_v34, %v1072_v37  ;;  %v1081_v53 = vrot.slane %v1068_v34, %v1080_v52  ;;  %s5521_s11 = scalar_lea.vmem [#allocation12], %s4923_s23  ;;  %s5522_s22 = scalar_lea.vmem [#allocation17], %s4923_s23 }
 0x13d   : > { %3539 = vmatprep.subr.bf16.mxu1 %v4527_v5  ;;  %s5524_s14 = scalar_lea.vmem [#allocation18], %s4923_s23  ;;  %s5525_s16 = sld [smem:[#allocation37_spill]] }
 0x13f   : > { %1220 = vmatpush1.bf16.msra.mxu0 %v3861_v11 }
 0x140   : > { %1221 = vmatprep.subr.bf16.mxu0 %v3862_v12  ;;  %3540 = vmatpush3.bf16.msra.mxu1 %v3877_v20 }
 0x141   : > { %3541 = vmatprep.subr.bf16.mxu1 %v4527_v5 }
 0x143   : > { %1222 = vmatpush1.bf16.msra.mxu0 %v3864_v15  ;;  %p3410_p10 = scmp.ne.s32.totalorder %s5525_s16, 1 }
 0x144   : > { %1223 = vmatprep.subr.bf16.mxu0 %v3865_v16  ;;  %3542 = vmatpush3.bf16.msra.mxu1 %v3878_v23  ;;  %s5527_s30 = sld [smem:[#allocation67_spill]] (!%p3410_p10) }
 0x145   : > { %3543 = vmatprep.subr.bf16.mxu1 %v4527_v5 }
 0x147   : > { %1224 = vmatpush1.bf16.msra.mxu0 %v3867_v18 }
 0x148   : > { %1225 = vmatprep.subr.bf16.mxu0 %v3868_v19  ;;  %3544 = vmatpush3.bf16.msra.mxu1 %v3879_v27 }
 0x149   : > { %3545 = vmatprep.subr.bf16.mxu1 %v4527_v5 }
 0x14b   : > { %1226 = vmatpush1.bf16.msra.mxu0 %v3870_v21 }
 0x14c   : > { %1227 = vmatprep.subr.bf16.mxu0 %v3871_v22  ;;  %3546 = vmatpush3.bf16.msra.mxu1 %v3880_v29 }
 0x14d   : > { %3547 = vmatprep.subr.bf16.mxu1 %v4527_v5 }
 0x14f   : > { %1228 = vmatpush1.bf16.msra.mxu0 %v3873_v24 }
 0x150   : > { %3577 = vmatprep.subr.bf16.mxu0 %v4527_v5  ;;  %3548 = vmatpush3.bf16.msra.mxu1 %v3881_v30 }
 0x151   : > { %3553 = vmatprep.subr.bf16.mxu1 %v4527_v5 }
 0x152   : > { %1246 = vmatmul.mubr.bf16.vlgmr.msra.gmra.mxu0 %v1035_v28 }
 0x153   : > { %3579 = vmatprep.mubr.msk.bf16.mxu0 %vm4528_vm0, %v4527_v5  ;;  %3550 = vmatmul.mubr.bf16.vlgmr.msra.gmra.mxu1 %v1035_v28 }
 0x154   : > { %3555 = vmatprep.mubr.msk.bf16.mxu1 %vm4528_vm0, %v4527_v5 }
 0x212   : > { %v1247_v36 = vpop.f32.mrf.mxu0 }
 0x213   : > { %v1248_v46 = vadd.f32 %v1247_v36, %v1073_v41  ;;  %v1290_v54 = vpop.f32.mrf.mxu1 }
 0x214   : > { %v1249_v38 = vpop.f32.mrf.mxu0  ;;  %v1291_v55 = vadd.f32 %v1290_v54, %v1081_v53 }
 0x215   : > { %v1250_v39 = vadd.f32 %v1249_v38, %v1077_v35  ;;  %v1297_v48 = vpack.c.bf16 %v1248_v46, %v1248_v46  ;;  %v3551_v56 = vpop.f32.mrf.mxu1 }
 0x216   : > { %v1251_v40 = vpop.f32.mrf.mxu0  ;;  %v5078_v57 = vpack.c.bf16 %v1291_v55, %v1291_v55 }
 0x217   : > { %v1298_v42 = vpack.c.bf16 %v1250_v39, %v1250_v39  ;;  %v1252_v50 = vadd.f32 %v1251_v40, %v1073_v41  ;;  %v1293_v58 = vpop.f32.mrf.mxu1 }
 0x218   : > { %v1253_v43 = vpop.f32.mrf.mxu0  ;;  %v1440_v59 = vsel %vm1438_vm2, %v5078_v57, 0  ;;  %v1294_v60 = vadd.f32 %v1293_v58, %v1081_v53 }
 0x219   : > { %v1322_v44 = vsel %vm1317_vm1, %v1298_v42, 0  ;;  %v1254_v45 = vadd.f32 %v1253_v43, %v1077_v35  ;;  %v1300_v51 = vpack.c.bf16 %v1252_v50, %v1252_v50  ;;  %v3552_v61 = vpop.f32.mrf.mxu1 }
 0x21a   : > { %3554 = vmatpush3.bf16.xpose.msra.mxu1 %v1322_v44  ;;  %v1302_v30 = vpack.c.bf16 %v1294_v60, %v1294_v60 }
 0x21b   : > { %3559 = vmatprep.subr.bf16.mxu1 %v4527_v5  ;;  %v1301_v47 = vpack.c.bf16 %v1254_v45, %v1254_v45 }
 0x21c   : > { %v1486_v35 = vsel %vm1438_vm2, %v1302_v30, 0 }
 0x21d   : > { %v1368_v49 = vsel %vm1317_vm1, %v1301_v47, 0 }
 0x221   : > { %3556 = vmatmul.mubr.msk.bf16.vlgmr.msra.gmra.mxu1 %vm1317_vm1, %v1297_v48 }
 0x222   : > { %3560 = vmatpush3.bf16.xpose.msra.mxu1 %v1368_v49  ;;  %3561 = vmatprep.mubr.msk.bf16.mxu1 %vm4528_vm0, %v4527_v5 }
 0x223   : > { %3565 = vmatprep.subr.bf16.mxu1 %v4527_v5 }
 0x229   : > { %3562 = vmatmul.mubr.msk.bf16.vlgmr.msra.gmra.mxu1 %vm1317_vm1, %v1300_v51 }
 0x22a   : > { %3567 = vmatprep.mubr.msk.bf16.mxu1 %vm4528_vm0, %v4527_v5  ;;  %3566 = vmatpush3.bf16.msra.mxu1 %v1440_v59 }
 0x22b   : > { %3571 = vmatprep.subr.bf16.mxu1 %v4527_v5 }
 0x2e1   : > { %v1358_v63 = vpop.f32.mrf.mxu1 }
 0x2e2   : > { %v1359_v0 = vadd.f32 %v5084_v62, %v1358_v63 }
 0x2e3   : > { %v3557_v1 = vpop.f32.mrf.mxu1 }
 0x2e4   : > { %v1411_v2 = vsel %vm1410_vm3, %v1359_v0, -inf }
 0x2e5   : > { %1412 = vmax.xlane.f32.xlu0 %v1411_v2  ;;  %v1361_v3 = vpop.f32.mrf.mxu1 }
 0x2e7   : > { %v3558_v6 = vpop.f32.mrf.mxu1 }
 0x2e9   : > { %v1404_v8 = vpop.f32.mrf.mxu1 }
 0x2ea   : > { %v1405_v9 = vadd.f32 %v5089_v7, %v1404_v8 }
 0x2eb   : > { %v3563_v10 = vpop.f32.mrf.mxu1 }
 0x2ec   : > { %v1414_v11 = vsel %vm1410_vm3, %v1405_v9, -inf }
 0x2ed   : > { %1415 = vmax.xlane.f32.xlu0 %v1414_v11  ;;  %v1407_v12 = vpop.f32.mrf.mxu1 }
 0x2ef   : > { %v3564_v13 = vpop.f32.mrf.mxu1 }
 0x303   : > { %1532 = vrot.lane.b32.xlu0 %v1298_v42, %s4529_s6 }
 0x36e   : > { %v1413_v14 = vpop.xlane.xlu0 %1412 }
 0x36f   : > { %v1417_v15 = vsub.f32 %v1359_v0, %v1413_v14 }
 0x371   : > { %v1419_v16 = vmul.f32 1.442695, %v1417_v15 }
 0x373   : > { %3970 = vpow2.f32 %v1419_v16 }
 0x376   : > { %v1416_v17 = vpop.xlane.xlu0 %1415 }
 0x377   : > { %v1418_v22 = vsub.f32 %v1405_v9, %v1416_v17 }
 0x379   : > { %v1421_v23 = vmul.f32 1.442695, %v1418_v22 }
 0x37a   : > { %v1533_v18 = vpop.permute.xlu0 %1532 }
 0x37b   : > { %v1538_v19 = vsel %vm1317_vm1, %v1533_v18, 0  ;;  %3972 = vpow2.f32 %v1421_v23 }
 0x37c   : > { %3578 = vmatpush3.bf16.xpose.msra.mxu0 %v1538_v19 }
 0x37d   : > { %3589 = vmatprep.subr.bf16.mxu0 %v4527_v5 }
 0x380   : > { %v3971_v20 = vpop.eup %3970 }
 0x381   : > { %v1423_v21 = vsel %vm1410_vm3, %v3971_v20, 0.0 }
 0x382   : > { %1424 = vadd.xlane.f32.xlu1 %v1423_v21 }
 0x388   : > { %v3973_v24 = vpop.eup %3972 }
 0x389   : > { %v1426_v27 = vsel %vm1410_vm3, %v3973_v24, 0.0 }
 0x393   : > { %1584 = vrot.lane.b32.xlu1 %v1301_v47, %s4529_s6 }
 0x3b7   : > { %1427 = vadd.xlane.f32.xlu1 %v1426_v27 }
 0x3c8   : > { %1529 = vrot.lane.b32.xlu1 %v1297_v48, %s4529_s6 }
 0x3cc   : > { %1581 = vrot.lane.b32.xlu1 %v1300_v51, %s4529_s6 }
 0x40b   : > { %v1425_v28 = vpop.xlane.xlu1 %1424 }
 0x40c   : > { %3974 = vrcp.f32 %v1425_v28  ;;  %v3882_v28 = vld [vmem:[%s4942_s10 + $0x38] sm:$0xff]  }
 0x40f   : > { %v1585_v36 = vpop.permute.xlu1 %1584 }
 0x410   : > { %v1590_v43 = vsel %vm1317_vm1, %v1585_v36, 0  ;;  %v3888_v36 = vld [vmem:[%s4942_s10 + $0x8] sm:$0xff]  }
 0x419   : > { %v3975_v29 = vpop.eup %3974 }
 0x41a   : > { %v1431_v31 = vmul.f32 %v3975_v29, %v3971_v20  ;;  %v3883_v29 = vld [vmem:[%s4942_s10 + $0x30] sm:$0xff]  }
 0x41c   : > { %v1433_v34 = vpack.c.bf16 %v1431_v31, %v1431_v31  ;;  %v3885_v31 = vld [vmem:[%s4942_s10 + $0x20] sm:$0xff]  }
 0x41e   : > { %3568 = vmatmul.mubr.msk.bf16.vlgmr.msra.gmra.mxu1 %vm1410_vm3, %v1433_v34  ;;  %v3886_v34 = vld [vmem:[%s4942_s10 + $0x18] sm:$0xff]  }
 0x41f   : > { %3572 = vmatpush3.bf16.msra.mxu1 %v1486_v35  ;;  %3573 = vmatprep.mubr.msk.bf16.mxu1 %vm4528_vm0, %v4527_v5  ;;  %v3887_v35 = vld [vmem:[%s4942_s10 + $0x10] sm:$0xff]  }
 0x420   : > { %3583 = vmatprep.subr.bf16.mxu1 %v4527_v5 }
 0x440   : > { %v1428_v38 = vpop.xlane.xlu1 %1427 }
 0x441   : > { %3976 = vrcp.f32 %v1428_v38 }
 0x444   : > { %v1530_v39 = vpop.permute.xlu1 %1529 }
 0x445   : > { %3580 = vmatmul.mubr.msk.bf16.vlgmr.msra.gmra.mxu0 %vm1317_vm1, %v1530_v39  ;;  %v3889_v39 = vld [vmem:[%s4942_s10] sm:$0xff]  }
 0x446   : > { %3591 = vmatprep.mubr.msk.bf16.mxu0 %vm4528_vm0, %v4527_v5 }
 0x448   : > { %v1582_v44 = vpop.permute.xlu1 %1581 }
 0x44e   : > { %v3977_v40 = vpop.eup %3976 }
 0x44f   : > { %v1432_v41 = vmul.f32 %v3977_v40, %v3973_v24 }
 0x451   : > { %v1434_v42 = vpack.c.bf16 %v1432_v41, %v1432_v41 }
 0x453   : > { %3574 = vmatmul.mubr.msk.bf16.vlgmr.msra.gmra.mxu1 %vm1410_vm3, %v1434_v42 }
 0x454   : > { %3584 = vmatpush3.bf16.xpose.msra.mxu1 %v1590_v43  ;;  %3585 = vmatprep.mubr.msk.bf16.mxu1 %vm4528_vm0, %v4527_v5 }
 0x455   : > { %3595 = vmatprep.subr.bf16.mxu1 %v4527_v5 }
 0x45b   : > { %3586 = vmatmul.mubr.msk.bf16.vlgmr.msra.gmra.mxu1 %vm1317_vm1, %v1582_v44 }
 0x45c   : > { %3597 = vmatprep.mubr.msk.bf16.mxu1 %vm4528_vm0, %v4527_v5 }
 0x4de   : > { %v5117_v45 = vpop.f32.mrf.mxu1 }
 0x4e0   : > { %v3569_v46 = vpop.f32.mrf.mxu1 }
 0x4e2   : > { %v1479_v47 = vpop.f32.mrf.mxu1 }
 0x4e4   : > { %v3570_v48 = vpop.f32.mrf.mxu1 }
 0x505   : > { %v1574_v49 = vpop.f32.mrf.mxu0 }
 0x506   : > { %v1575_v50 = vadd.f32 %v5084_v62, %v1574_v49 }
 0x507   : > { %v3581_v51 = vpop.f32.mrf.mxu0 }
 0x508   : > { %v1632_v53 = vsel %vm1410_vm3, %v1575_v50, -inf }
 0x509   : > { %1633 = vmax.xlane.f32.xlu0 %v1632_v53  ;;  %v1577_v54 = vpop.f32.mrf.mxu0 }
 0x50b   : > { %v3582_v55 = vpop.f32.mrf.mxu0 }
 0x50c   : > { %v3332_v55 = vld [vmem:[%s5519_s9] ss:$0 sm:$0xff] }
 0x513   : > { %v5121_v56 = vpop.f32.mrf.mxu1 }
 0x515   : > { %v3575_v58 = vpop.f32.mrf.mxu1 }
 0x517   : > { %v1525_v59 = vpop.f32.mrf.mxu1 }
 0x519   : > { %v3576_v60 = vpop.f32.mrf.mxu1 }
 0x51b   : > { %v1626_v61 = vpop.f32.mrf.mxu1 }
 0x51c   : > { %v1627_v63 = vadd.f32 %v5089_v7, %v1626_v61 }
 0x51d   : > { %v3587_v0 = vpop.f32.mrf.mxu1 }
 0x51e   : > { %v1635_v1 = vsel %vm1410_vm3, %v1627_v63, -inf }
 0x51f   : > { %1636 = vmax.xlane.f32.xlu1 %v1635_v1  ;;  %v1629_v2 = vpop.f32.mrf.mxu1  ;;  %v3890_v1 = vld [vmem:[%s5001_s4 + $0xe0] ss:$16 sps:$4 sm:$0xff]  }
 0x520   : > { %v3892_v2 = vld [vmem:[%s5001_s4 + $0xe4] ss:$16 sps:$4 sm:$0xff]  }
 0x521   : > { %v3588_v62 = vpop.f32.mrf.mxu1 }
 0x522   : > { %v3893_v62 = vld [vmem:[%s5001_s4 + $0xe8] ss:$16 sps:$4 sm:$0xff]  }
 0x530   : > { %1706 = vrot.lane.b32.xlu1 %v1302_v30, %s4529_s6  ;;  %v3884_v30 = vld [vmem:[%s4942_s10 + $0x28] sm:$0xff]  }
 0x592   : > { %v1634_v3 = vpop.xlane.xlu0 %1633 }
 0x593   : > { %v1638_v6 = vsub.f32 %v1575_v50, %v1634_v3  ;;  %v3895_v3 = vld [vmem:[%s5001_s4 + $0xec] ss:$16 sps:$4 sm:$0xff]  }
 0x595   : > { %v1640_v8 = vmul.f32 1.442695, %v1638_v6 }
 0x597   : > { %3978 = vpow2.f32 %v1640_v8 }
 0x5a4   : > { %v3979_v9 = vpop.eup %3978 }
 0x5a5   : > { %v1644_v10 = vsel %vm1410_vm3, %v3979_v9, 0.0 }
 0x5a6   : > { %1645 = vadd.xlane.f32.xlu0 %v1644_v10 }
 0x5a8   : > { %v1637_v11 = vpop.xlane.xlu1 %1636 }
 0x5a9   : > { %v1639_v12 = vsub.f32 %v1627_v63, %v1637_v11 }
 0x5ab   : > { %v1642_v13 = vmul.f32 1.442695, %v1639_v12  ;;  %v3898_v12 = vld [vmem:[%s5001_s4 + $0xc4] ss:$16 sps:$4 sm:$0xff]  }
 0x5ac   : > { %v1707_v7 = vpop.permute.xlu1 %1706 }
 0x5ad   : > { %3980 = vpow2.f32 %v1642_v13  ;;  %v1712_v14 = vsel %vm1438_vm2, %v1707_v7, 0  ;;  %v3901_v13 = vld [vmem:[%s5001_s4 + $0xcc] ss:$16 sps:$4 sm:$0xff]   ;;  %v3896_v7 = vld [vmem:[%s5001_s4 + $0xc0] ss:$16 sps:$4 sm:$0xff]  }
 0x5ae   : > { %3596 = vmatpush3.bf16.msra.mxu1 %v1712_v14  ;;  %v3899_v14 = vld [vmem:[%s5001_s4 + $0xc8] ss:$16 sps:$4 sm:$0xff]  }
 0x5af   : > { %2135 = vmatprep.subr.bf16.mxu1 %v3892_v2  ;;  %v3942_v2 = vld [vmem:[%s4959_s26 + $0x70] sm:$0xff]  }
 0x5ba   : > { %v3981_v15 = vpop.eup %3980 }
 0x5bb   : > { %v1647_v16 = vsel %vm1410_vm3, %v3981_v15, 0.0 }
 0x5bc   : > { %1648 = vadd.xlane.f32.xlu0 %v1647_v16  ;;  %v3907_v16 = vld [vmem:[%s5001_s4 + $0xac] ss:$16 sps:$4 sm:$0xff]  }
 0x5d2   : > { %1657 = vrot.lane.b32.xlu0 %v5078_v57, %s4529_s6 }
 0x62f   : > { %v1646_v17 = vpop.xlane.xlu0 %1645 }
 0x630   : > { %3982 = vrcp.f32 %v1646_v17  ;;  %v3902_v17 = vld [vmem:[%s5001_s4 + $0xa0] ss:$16 sps:$4 sm:$0xff]  }
 0x63d   : > { %v3983_v18 = vpop.eup %3982 }
 0x63e   : > { %v1652_v20 = vmul.f32 %v3983_v18, %v3979_v9  ;;  %v3905_v18 = vld [vmem:[%s5001_s4 + $0xa8] ss:$16 sps:$4 sm:$0xff]  }
 0x640   : > { %v1654_v23 = vpack.c.bf16 %v1652_v20, %v1652_v20  ;;  %v3910_v20 = vld [vmem:[%s5001_s4 + $0x84] ss:$16 sps:$4 sm:$0xff]  }
 0x645   : > { %v1649_v19 = vpop.xlane.xlu0 %1648 }
 0x646   : > { %3984 = vrcp.f32 %v1649_v19  ;;  %v3908_v19 = vld [vmem:[%s5001_s4 + $0x80] ss:$16 sps:$4 sm:$0xff]  }
 0x649   : > { %v1658_v21 = vpop.permute.xlu0 %1657 }
 0x64a   : > { %v1663_v22 = vsel %vm1438_vm2, %v1658_v21, 0  ;;  %v3911_v21 = vld [vmem:[%s5001_s4 + $0x88] ss:$16 sps:$4 sm:$0xff]  }
 0x64b   : > { %3590 = vmatpush3.bf16.msra.mxu0 %v1663_v22  ;;  %v3913_v22 = vld [vmem:[%s5001_s4 + $0x8c] ss:$16 sps:$4 sm:$0xff]  }
 0x64c   : > { %3601 = vmatprep.subr.bf16.mxu0 %v4527_v5 }
 0x64e   : > { %3592 = vmatmul.mubr.msk.bf16.vlgmr.msra.gmra.mxu0 %vm1410_vm3, %v1654_v23  ;;  %v3916_v23 = vld [vmem:[%s5001_s4 + $0x64] ss:$16 sps:$4 sm:$0xff]  }
 0x64f   : > { %3617 = vmatprep.mubr.msk.bf16.mxu0 %vm4528_vm0, %v4527_v5  ;;  %3602 = vmatpush3.bf16.msra.mxu0 %v3882_v28  ;;  %v3922_v28 = vld [vmem:[%s5001_s4 + $0x44] ss:$16 sps:$4 sm:$0xff]  }
 0x650   : > { %3603 = vmatprep.subr.bf16.mxu0 %v4527_v5 }
 0x653   : > { %v3985_v57 = vpop.eup %3984  ;;  %3604 = vmatpush3.bf16.msra.mxu0 %v3883_v29  ;;  %v3925_v29 = vld [vmem:[%s5001_s4 + $0x4c] ss:$16 sps:$4 sm:$0xff]  }
 0x654   : > { %v1653_v24 = vmul.f32 %v3985_v57, %v3981_v15  ;;  %3605 = vmatprep.subr.bf16.mxu0 %v4527_v5  ;;  %v3904_v15 = vld [vmem:[%s5001_s4 + $0xa4] ss:$16 sps:$4 sm:$0xff]   ;;  %v3919_v57 = vld [vmem:[%s5001_s4 + $0x6c] ss:$16 sps:$4 sm:$0xff]  }
 0x656   : > { %v1655_v27 = vpack.c.bf16 %v1653_v24, %v1653_v24  ;;  %v3914_v24 = vld [vmem:[%s5001_s4 + $0x60] ss:$16 sps:$4 sm:$0xff]  }
 0x657   : > { %3606 = vmatpush3.bf16.msra.mxu0 %v3884_v30  ;;  %v3920_v30 = vld [vmem:[%s5001_s4 + $0x40] ss:$16 sps:$4 sm:$0xff]  }
 0x658   : > { %3598 = vmatmul.mubr.msk.bf16.vlgmr.msra.gmra.mxu1 %vm1410_vm3, %v1655_v27  ;;  %3607 = vmatprep.subr.bf16.mxu0 %v4527_v5  ;;  %v3917_v27 = vld [vmem:[%s5001_s4 + $0x68] ss:$16 sps:$4 sm:$0xff]  }
 0x659   : > { %2167 = vmatprep.mubr.bf16.mxu1 %v4526_v4  ;;  %2136 = vmatpush1.bf16.msra.mxu1 %v3890_v1  ;;  %v3941_v1 = vld [vmem:[%s4959_s26 + $0xb8] sm:$0xff]  }
 0x65a   : > { %2137 = vmatprep.subr.bf16.mxu1 %v3898_v12  ;;  %v3953_v12 = vld [vmem:[%s4959_s26 + $0xa0] sm:$0xff]  }
 0x65b   : > { %3608 = vmatpush3.bf16.msra.mxu0 %v3885_v31  ;;  %v3923_v31 = vld [vmem:[%s5001_s4 + $0x48] ss:$16 sps:$4 sm:$0xff]  }
 0x65c   : > { %3609 = vmatprep.subr.bf16.mxu0 %v4527_v5 }
 0x65d   : > { %2138 = vmatpush1.bf16.msra.mxu1 %v3896_v7  ;;  %v3955_v7 = vld [vmem:[%s4959_s26 + $0xd8] sm:$0xff]  }
 0x65e   : > { %2139 = vmatprep.subr.bf16.mxu1 %v3904_v15  ;;  %v3957_v15 = vld [vmem:[%s4959_s26 + $0x98] sm:$0xff]  }
 0x65f   : > { %3610 = vmatpush3.bf16.msra.mxu0 %v3886_v34  ;;  %v3928_v34 = vld [vmem:[%s5001_s4 + $0x24] ss:$16 sps:$4 sm:$0xff]  }
 0x660   : > { %3611 = vmatprep.subr.bf16.mxu0 %v4527_v5 }
 0x661   : > { %2140 = vmatpush1.bf16.msra.mxu1 %v3902_v17  ;;  %v3959_v17 = vld [vmem:[%s4959_s26 + $0xd0] sm:$0xff]  }
 0x662   : > { %2141 = vmatprep.subr.bf16.mxu1 %v3910_v20  ;;  %v3962_v20 = vld [vmem:[%s4959_s26 + $0x48] sm:$0xff]  }
 0x663   : > { %3612 = vmatpush3.bf16.msra.mxu0 %v3887_v35  ;;  %v3931_v35 = vld [vmem:[%s5001_s4 + $0x2c] ss:$16 sps:$4 sm:$0xff]  }
 0x664   : > { %3613 = vmatprep.subr.bf16.mxu0 %v4527_v5 }
 0x665   : > { %2142 = vmatpush1.bf16.msra.mxu1 %v3908_v19  ;;  %v3961_v19 = vld [vmem:[%s4959_s26 + $0x90] sm:$0xff]  }
 0x666   : > { %2143 = vmatprep.subr.bf16.mxu1 %v3916_v23  ;;  %v3965_v23 = vld [vmem:[%s4959_s26 + $0x88] sm:$0xff]  }
 0x667   : > { %3614 = vmatpush3.bf16.msra.mxu0 %v3888_v36  ;;  %v3926_v36 = vld [vmem:[%s5001_s4 + $0x20] ss:$16 sps:$4 sm:$0xff]  }
 0x668   : > { %3615 = vmatprep.subr.bf16.mxu0 %v4527_v5 }
 0x669   : > { %2144 = vmatpush1.bf16.msra.mxu1 %v3914_v24  ;;  %v3967_v24 = vld [vmem:[%s4959_s26 + $0xc0] sm:$0xff]  }
 0x66a   : > { %2145 = vmatprep.subr.bf16.mxu1 %v3922_v28  ;;  %v3969_v28 = vld [vmem:[%s4959_s26 + $0x80] sm:$0xff]  }
 0x66b   : > { %3616 = vmatpush3.bf16.msra.mxu0 %v3889_v39  ;;  %v3934_v39 = vld [vmem:[%s5001_s4 + $0x4] ss:$16 sps:$4 sm:$0xff]  }
 0x66c   : > { %2178 = vmatprep.subr.bf16.mxu0 %v3895_v3  ;;  %v3944_v3 = vld [vmem:[%s4959_s26 + $0x30] sm:$0xff]  }
 0x66d   : > { %2146 = vmatpush1.bf16.msra.mxu1 %v3920_v30  ;;  %v1969_v30 = vsub.s32 3, %v5056_v32 }
 0x66e   : > { %2147 = vmatprep.subr.bf16.mxu1 %v3928_v34 }
 0x671   : > { %2148 = vmatpush1.bf16.msra.mxu1 %v3926_v36 }
 0x672   : > { %2149 = vmatprep.subr.bf16.mxu1 %v3934_v39 }
 0x70e   : > { %v1699_v38 = vpop.f32.mrf.mxu0 }
 0x710   : > { %v3593_v40 = vpop.f32.mrf.mxu0 }
 0x711   : > { %v3937_v40 = vld [vmem:[%s5001_s4 + $0xc] ss:$16 sps:$4 sm:$0xff]  }
 0x712   : > { %v1702_v41 = vpop.f32.mrf.mxu0 }
 0x713   : > { %v3932_v41 = vld [vmem:[%s5001_s4] ss:$16 sps:$4 sm:$0xff]  }
 0x714   : > { %v3594_v42 = vpop.f32.mrf.mxu0  ;;  %2150 = vmatpush1.bf16.msra.mxu1 %v3932_v41 }
 0x715   : > { %v3935_v42 = vld [vmem:[%s5001_s4 + $0x8] ss:$16 sps:$4 sm:$0xff]  }
 0x718   : > { %v1748_v43 = vpop.f32.mrf.mxu1 }
 0x719   : > { %v3845_v44 = vpack.i.bf16 %v1748_v43, %v1699_v38  ;;  %v3929_v38 = vld [vmem:[%s5001_s4 + $0x28] ss:$16 sps:$4 sm:$0xff]   ;;  %s5520_s4 = scalar_lea.vmem [#allocation11], %s4923_s23 }
 0x71a   : > { %v3599_v46 = vpop.f32.mrf.mxu1 }
 0x71b   : > { %3846 = vrot.lane.b32.xlu1 %v3845_v44, %s4529_s6 }
 0x71c   : > { %v1751_v47 = vpop.f32.mrf.mxu1 }
 0x71e   : > { %v3600_v48 = vpop.f32.mrf.mxu1 }
 0x78d   : > { %v3847_v49 = vpop.permute.xlu1 %3846 }
 0x78e   : > { %v3849_v50 = vunpack.i.h.bf16 %v3847_v49  ;;  %v3848_v51 = vunpack.i.l.bf16 %v3847_v49 }
 0x790   : > { %v1763_v5 = vsel %vm1317_vm1, %v5121_v56, %v3849_v50  ;;  %v1762_v53 = vsel %vm1317_vm1, %v5117_v45, %v3848_v51 }
 0x791   : > { %v1764_v54 = vpack.c.bf16 %v1763_v5, %v1762_v53  ;;  %v3341_v5 = vld [vmem:[%s5520_s4] ss:$0 sm:$0xff] }
 0x793   : > { %3618 = vmatmul.mubr.bf16.vlgmr.msra.gmra.mxu0 %v1764_v54 }
 0x794   : > { %2210 = vmatprep.mubr.bf16.mxu0 %v4526_v4  ;;  %2179 = vmatpush1.bf16.msra.mxu0 %v3893_v62  ;;  %v3943_v62 = vld [vmem:[%s4959_s26 + $0xf0] sm:$0xff]  }
 0x795   : > { %2180 = vmatprep.subr.bf16.mxu0 %v3901_v13  ;;  %v3954_v13 = vld [vmem:[%s4959_s26 + $0x58] sm:$0xff]  }
 0x798   : > { %2181 = vmatpush1.bf16.msra.mxu0 %v3899_v14  ;;  %v3956_v14 = vld [vmem:[%s4959_s26 + $0x18] sm:$0xff]  }
 0x799   : > { %2182 = vmatprep.subr.bf16.mxu0 %v3907_v16  ;;  %v3958_v16 = vld [vmem:[%s4959_s26 + $0x50] sm:$0xff]  }
 0x79c   : > { %2183 = vmatpush1.bf16.msra.mxu0 %v3905_v18  ;;  %v3960_v18 = vld [vmem:[%s4959_s26 + $0x10] sm:$0xff]  }
 0x79d   : > { %2184 = vmatprep.subr.bf16.mxu0 %v3913_v22  ;;  %v3964_v22 = vld [vmem:[%s4959_s26 + $0x8] sm:$0xff]  }
 0x7a0   : > { %2185 = vmatpush1.bf16.msra.mxu0 %v3911_v21  ;;  %v3963_v21 = vld [vmem:[%s4959_s26 + $0xc8] sm:$0xff]  }
 0x7a1   : > { %2186 = vmatprep.subr.bf16.mxu0 %v3919_v57  ;;  %v3966_v57 = vld [vmem:[%s4959_s26 + $0x40] sm:$0xff]  }
 0x7a4   : > { %2187 = vmatpush1.bf16.msra.mxu0 %v3917_v27  ;;  %v3968_v27 = vld [vmem:[%s4959_s26] sm:$0xff]  }
 0x7a5   : > { %2188 = vmatprep.subr.bf16.mxu0 %v3925_v29  ;;  %v1953_v29 = vld [vmem:[%s4957_s2] sm:$0xf]  ;;  %s5526_s2 = sld [smem:[#allocation65_spill]] (!%p3410_p10) }
 0x7a6   : > { %v1966_v34 = vrot.slane %v1953_v29, %v1080_v52  ;;  %v1970_v36 = vrot.slane %v1953_v29, %v1969_v30 }
 0x7a8   : > { %2189 = vmatpush1.bf16.msra.mxu0 %v3923_v31  ;;  %v1958_v31 = vrot.slane %v1953_v29, %v1072_v37 }
 0x7a9   : > { %2190 = vmatprep.subr.bf16.mxu0 %v3931_v35  ;;  %v1962_v35 = vrot.slane %v1953_v29, %v1076_v33 }
 0x7ac   : > { %2191 = vmatpush1.bf16.msra.mxu0 %v3929_v38 }
 0x7ad   : > { %2192 = vmatprep.subr.bf16.mxu0 %v3937_v40 }
 0x7b0   : > { %2193 = vmatpush1.bf16.msra.mxu0 %v3935_v42 }
 0x853   : > { %v1870_v58 = vpop.f32.mrf.mxu0 }
 0x854   : > { %v1871_v59 = vadd.f32 %v3332_v55, %v1870_v58  ;;  %v3342_v58 = vld [vmem:[%s5521_s11] ss:$0 sm:$0xff] }
 0x855   : > { %v3619_v60 = vpop.f32.mrf.mxu0 }
 0x856   : > { %v1877_v61 = vadd.f32 %v1871_v59, %v5035_v25 }
 0x857   : > { %v1873_v63 = vpop.f32.mrf.mxu0 }
 0x858   : > { %v1874_v56 = vadd.f32 %v3332_v55, %v1873_v63  ;;  %1881 = vadd.xlane.f32.xlu1 %v1877_v61 }
 0x859   : > { %v3620_v0 = vpop.f32.mrf.mxu0 }
 0x85a   : > { %v1878_v45 = vadd.f32 %v1874_v56, %v5037_v26  ;;  %v3938_v56 = vld [vmem:[%s4959_s26 + $0x78] sm:$0xff]  }
 0x85b   : > { %v3939_v0 = vld [vmem:[%s4959_s26 + $0xf8] sm:$0xff]   ;;  %3471 = vmatprep.subr.bf16.mxu1 %v3938_v56 }
 0x85c   : > { %1883 = vadd.xlane.f32.xlu0 %v1878_v45  ;;  %3493 = vmatprep.subr.bf16.mxu0 %v3939_v0 }
 0x8e1   : > { %v1882_v4 = vpop.xlane.xlu1 %1881 }
 0x8e2   : > { %v1886_v25 = vmul.f32 0.0078125, %v1882_v4  ;;  %v3945_v4 = vld [vmem:[%s4959_s26 + $0xb0] sm:$0xff]  }
 0x8e4   : > { %v5167_v6 = vsub.f32 %v1877_v61, %v1886_v25  ;;  %v3946_v25 = vld [vmem:[%s4959_s26 + $0x68] sm:$0xff]  }
 0x8e5   : > { %v1884_v8 = vpop.xlane.xlu0 %1883 }
 0x8e6   : > { %v1887_v26 = vmul.f32 0.0078125, %v1884_v8  ;;  %v1890_v9 = vmul.f32 %v5167_v6, %v5167_v6  ;;  %v3948_v8 = vld [vmem:[%s4959_s26 + $0x28] sm:$0xff]  }
 0x8e8   : > { %v5171_v10 = vsub.f32 %v1878_v45, %v1887_v26  ;;  %1892 = vadd.xlane.f32.xlu0 %v1890_v9  ;;  %v3940_v45 = vld [vmem:[%s4959_s26 + $0x38] sm:$0xff]   ;;  %v3949_v26 = vld [vmem:[%s4959_s26 + $0xa8] sm:$0xff]   ;;  %v3950_v9 = vld [vmem:[%s4959_s26 + $0x60] sm:$0xff]  }
 0x8ea   : > { %v1891_v11 = vmul.f32 %v5171_v10, %v5171_v10 }
 0x8ec   : > { %1894 = vadd.xlane.f32.xlu0 %v1891_v11  ;;  %v3952_v11 = vld [vmem:[%s4959_s26 + $0x20] sm:$0xff]  }
 0x971   : > { %v1893_v43 = vpop.xlane.xlu0 %1892 }
 0x972   : > { %v1896_v44 = vmul.f32 0.0078125, %v1893_v43 }
 0x974   : > { %v1898_v46 = vadd.f32 1e-12, %v1896_v44 }
 0x975   : > { %v1895_v47 = vpop.xlane.xlu0 %1894 }
 0x976   : > { %3986 = vrsqrt.f32 %v1898_v46  ;;  %v1897_v48 = vmul.f32 0.0078125, %v1895_v47 }
 0x978   : > { %v1899_v49 = vadd.f32 1e-12, %v1897_v48 }
 0x97a   : > { %3988 = vrsqrt.f32 %v1899_v49 }
 0x983   : > { %v3987_v50 = vpop.eup %3986 }
 0x984   : > { %v1902_v51 = vmul.f32 %v3987_v50, %v5167_v6  ;;  %v3947_v6 = vld [vmem:[%s4959_s26 + $0xe8] sm:$0xff]  }
 0x986   : > { %v1910_v55 = vmul.f32 %v3341_v5, %v1902_v51 }
 0x987   : > { %v3989_v53 = vpop.eup %3988 }
 0x988   : > { %v1903_v54 = vmul.f32 %v3989_v53, %v5171_v10  ;;  %v5209_v60 = vadd.f32 %v3342_v58, %v1910_v55  ;;  %v3951_v10 = vld [vmem:[%s4959_s26 + $0xe0] sm:$0xff]  }
 0x98a   : > { %v1911_v59 = vmul.f32 %v3341_v5, %v1903_v54 }
 0x98c   : > { %v5211_v61 = vadd.f32 %v3342_v58, %v1911_v59 }
 0x98e   : > { %v1920_v63 = vpack.c.bf16 %v5211_v61, %v5209_v60 }
 0x990   : > { %2168 = vmatmul.mubr.bf16.vlgmr.msra.gmra.mxu1 %v1920_v63  ;;  %2211 = vmatmul.mubr.bf16.vlgmr.msra.gmra.mxu0 %v1920_v63 }
 0x991   : > { %3472 = vmatpush3.bf16.msra.mxu1 %v3940_v45  ;;  %3494 = vmatpush3.bf16.msra.mxu0 %v3941_v1 }
 0x992   : > { %3473 = vmatprep.subr.bf16.mxu1 %v3942_v2  ;;  %3495 = vmatprep.subr.bf16.mxu0 %v3943_v62 }
 0x995   : > { %3474 = vmatpush3.bf16.msra.mxu1 %v3944_v3  ;;  %3496 = vmatpush3.bf16.msra.mxu0 %v3945_v4 }
 0x996   : > { %3475 = vmatprep.subr.bf16.mxu1 %v3946_v25  ;;  %3497 = vmatprep.subr.bf16.mxu0 %v3947_v6 }
 0x999   : > { %3476 = vmatpush3.bf16.msra.mxu1 %v3948_v8  ;;  %3498 = vmatpush3.bf16.msra.mxu0 %v3949_v26 }
 0x99a   : > { %3477 = vmatprep.subr.bf16.mxu1 %v3950_v9  ;;  %3499 = vmatprep.subr.bf16.mxu0 %v3951_v10 }
 0x99d   : > { %3478 = vmatpush3.bf16.msra.mxu1 %v3952_v11  ;;  %3500 = vmatpush3.bf16.msra.mxu0 %v3953_v12 }
 0x99e   : > { %3479 = vmatprep.subr.bf16.mxu1 %v3954_v13  ;;  %3501 = vmatprep.subr.bf16.mxu0 %v3955_v7 }
 0x9a1   : > { %3480 = vmatpush3.bf16.msra.mxu1 %v3956_v14  ;;  %3502 = vmatpush3.bf16.msra.mxu0 %v3957_v15 }
 0x9a2   : > { %3481 = vmatprep.subr.bf16.mxu1 %v3958_v16  ;;  %3503 = vmatprep.subr.bf16.mxu0 %v3959_v17 }
 0x9a5   : > { %3482 = vmatpush3.bf16.msra.mxu1 %v3960_v18  ;;  %3504 = vmatpush3.bf16.msra.mxu0 %v3961_v19 }
 0x9a6   : > { %3483 = vmatprep.subr.bf16.mxu1 %v3962_v20  ;;  %3505 = vmatprep.subr.bf16.mxu0 %v3963_v21 }
 0x9a9   : > { %3484 = vmatpush3.bf16.msra.mxu1 %v3964_v22  ;;  %3506 = vmatpush3.bf16.msra.mxu0 %v3965_v23 }
 0x9aa   : > { %3485 = vmatprep.subr.bf16.mxu1 %v3966_v57  ;;  %3507 = vmatprep.subr.bf16.mxu0 %v3967_v24 }
 0x9ad   : > { %3486 = vmatpush3.bf16.msra.mxu1 %v3968_v27  ;;  %3508 = vmatpush3.bf16.msra.mxu0 %v3969_v28 }
 0xa50   : > { %v2169_v38 = vpop.f32.mrf.mxu1  ;;  %v2212_v39 = vpop.f32.mrf.mxu0 }
 0xa51   : > { %v5255_v40 = vadd.f32 %v2169_v38, %v1958_v31  ;;  %v5257_v41 = vadd.f32 %v2212_v39, %v1966_v34 }
 0xa52   : > { %v2171_v42 = vpop.f32.mrf.mxu1  ;;  %v2214_v43 = vpop.f32.mrf.mxu0 }
 0xa53   : > { %v2221_v44 = vmul.f32 %v5255_v40, %v5255_v40  ;;  %v2223_v37 = vmul.f32 %v5257_v41, %v5257_v41  ;;  %v5263_v46 = vadd.f32 %v2171_v42, %v1962_v35  ;;  %v5265_v52 = vadd.f32 %v2214_v43, %v1970_v36 }
 0xa54   : > { %v2173_v32 = vpop.f32.mrf.mxu1  ;;  %v2216_v33 = vpop.f32.mrf.mxu0 }
 0xa55   : > { %v2229_v47 = vmul.f32 %v2221_v44, %v5255_v40  ;;  %v2231_v48 = vmul.f32 %v2223_v37, %v5257_v41  ;;  %v2222_v49 = vmul.f32 %v5263_v46, %v5263_v46  ;;  %v2224_v50 = vmul.f32 %v5265_v52, %v5265_v52 }
 0xa56   : > { %v5273_v51 = vadd.f32 %v2173_v32, %v1958_v31  ;;  %v5275_v5 = vadd.f32 %v2216_v33, %v1966_v34  ;;  %v2175_v53 = vpop.f32.mrf.mxu1  ;;  %v2218_v54 = vpop.f32.mrf.mxu0 }
 0xa57   : > { %v2237_v55 = vmul.f32 0.044715, %v2229_v47  ;;  %v2239_v58 = vmul.f32 0.044715, %v2231_v48  ;;  %v2230_v59 = vmul.f32 %v2222_v49, %v5263_v46  ;;  %v2232_v63 = vmul.f32 %v2224_v50, %v5265_v52 }
 0xa58   : > { %v2225_v56 = vmul.f32 %v5273_v51, %v5273_v51  ;;  %v2227_v0 = vmul.f32 %v5275_v5, %v5275_v5  ;;  %v5283_v45 = vadd.f32 %v2175_v53, %v1962_v35  ;;  %v5285_v1 = vadd.f32 %v2218_v54, %v1970_v36 }
 0xa59   : > { %v2245_v2 = vadd.f32 %v2237_v55, %v5255_v40  ;;  %v2247_v62 = vadd.f32 %v2239_v58, %v5257_v41  ;;  %v2238_v3 = vmul.f32 0.044715, %v2230_v59  ;;  %v2240_v4 = vmul.f32 0.044715, %v2232_v63 }
 0xa5a   : > { %v2233_v25 = vmul.f32 %v2225_v56, %v5273_v51  ;;  %v2235_v6 = vmul.f32 %v2227_v0, %v5275_v5  ;;  %v2226_v8 = vmul.f32 %v5283_v45, %v5283_v45  ;;  %v2228_v26 = vmul.f32 %v5285_v1, %v5285_v1 }
 0xa5b   : > { %v2253_v9 = vmul.f32 0.7978846, %v2245_v2  ;;  %v2255_v10 = vmul.f32 0.7978846, %v2247_v62  ;;  %v2246_v11 = vadd.f32 %v2238_v3, %v5263_v46  ;;  %v2248_v12 = vadd.f32 %v2240_v4, %v5265_v52 }
 0xa5c   : > { %v2241_v13 = vmul.f32 0.044715, %v2233_v25  ;;  %v2243_v7 = vmul.f32 0.044715, %v2235_v6  ;;  %v2234_v14 = vmul.f32 %v2226_v8, %v5283_v45  ;;  %v2236_v15 = vmul.f32 %v2228_v26, %v5285_v1 }
 0xa5d   : > { %3990 = vtanh.f32 %v2253_v9  ;;  %v2254_v16 = vmul.f32 0.7978846, %v2246_v11  ;;  %v2256_v17 = vmul.f32 0.7978846, %v2248_v12 }
 0xa5e   : > { %3992 = vtanh.f32 %v2255_v10  ;;  %v2249_v18 = vadd.f32 %v2241_v13, %v5273_v51  ;;  %v2251_v19 = vadd.f32 %v2243_v7, %v5275_v5  ;;  %v2242_v20 = vmul.f32 0.044715, %v2234_v14 }
 0xa5f   : > { %3994 = vtanh.f32 %v2254_v16  ;;  %v2244_v21 = vmul.f32 0.044715, %v2236_v15 }
 0xa60   : > { %3996 = vtanh.f32 %v2256_v17  ;;  %v2257_v22 = vmul.f32 0.7978846, %v2249_v18  ;;  %v2259_v23 = vmul.f32 0.7978846, %v2251_v19  ;;  %v2250_v57 = vadd.f32 %v2242_v20, %v5283_v45 }
 0xa61   : > { %v2252_v24 = vadd.f32 %v2244_v21, %v5285_v1 }
 0xa62   : > { %3998 = vtanh.f32 %v2257_v22  ;;  %v2258_v27 = vmul.f32 0.7978846, %v2250_v57 }
 0xa63   : > { %4000 = vtanh.f32 %v2259_v23  ;;  %v2260_v28 = vmul.f32 0.7978846, %v2252_v24 }
 0xa64   : > { %4002 = vtanh.f32 %v2258_v27 }
 0xa65   : > { %4004 = vtanh.f32 %v2260_v28 }
 0xa6a   : > { %v3991_v29 = vpop.eup %3990 }
 0xa6b   : > { %v3993_v30 = vpop.eup %3992  ;;  %v2269_v38 = vadd.f32 1.0, %v3991_v29 }
 0xa6c   : > { %v3995_v31 = vpop.eup %3994  ;;  %v2271_v43 = vadd.f32 1.0, %v3993_v30 }
 0xa6d   : > { %v3997_v34 = vpop.eup %3996  ;;  %v2270_v35 = vadd.f32 1.0, %v3995_v31  ;;  %v2277_v50 = vmul.f32 0.5, %v2269_v38  ;;  %v3408_v38 = vld [vmem:[%s1023_s21] ss:$0 sm:$0xff] }
 0xa6e   : > { %v2272_v39 = vadd.f32 1.0, %v3997_v34  ;;  %v2279_v58 = vmul.f32 0.5, %v2271_v43 }
 0xa6f   : > { %v3999_v36 = vpop.eup %3998  ;;  %v2278_v49 = vmul.f32 0.5, %v2270_v35  ;;  %v2285_v3 = vmul.f32 %v2277_v50, %v5255_v40 }
 0xa70   : > { %v4001_v42 = vpop.eup %4000  ;;  %v2273_v44 = vadd.f32 1.0, %v3999_v36  ;;  %v2280_v55 = vmul.f32 0.5, %v2272_v39  ;;  %v2287_v6 = vmul.f32 %v2279_v58, %v5257_v41 }
 0xa71   : > { %v4003_v37 = vpop.eup %4002  ;;  %v2275_v32 = vadd.f32 1.0, %v4001_v42  ;;  %v2286_v2 = vmul.f32 %v2278_v49, %v5263_v46  ;;  %v3409_v42 = vld [vmem:[%s5524_s14] ss:$0 sm:$0xff] }
 0xa72   : > { %v4005_v33 = vpop.eup %4004  ;;  %v2281_v47 = vmul.f32 0.5, %v2273_v44  ;;  %v2274_v48 = vadd.f32 1.0, %v4003_v37  ;;  %v2288_v4 = vmul.f32 %v2280_v55, %v5265_v52 }
 0xa73   : > { %v2283_v53 = vmul.f32 0.5, %v2275_v32  ;;  %v2276_v54 = vadd.f32 1.0, %v4005_v33 }
 0xa74   : > { %v2282_v59 = vmul.f32 0.5, %v2274_v48  ;;  %v2289_v63 = vmul.f32 %v2281_v47, %v5273_v51 }
 0xa75   : > { %v2284_v56 = vmul.f32 0.5, %v2276_v54  ;;  %v2291_v0 = vmul.f32 %v2283_v53, %v5275_v5 }
 0xa76   : > { %v2290_v62 = vmul.f32 %v2282_v59, %v5283_v45  ;;  %v2293_v9 = vpack.c.bf16 %v2289_v63, %v2285_v3  ;;  %v3375_v45 = vld [vmem:[%s5522_s22] ss:$0 sm:$0xff] }
 0xa77   : > { %v2292_v25 = vmul.f32 %v2284_v56, %v5285_v1  ;;  %v2295_v51 = vpack.c.bf16 %v2291_v0, %v2287_v6 }
 0xa78   : > { %v2294_v8 = vpack.c.bf16 %v2290_v62, %v2286_v2 }
 0xa79   : > { %v2296_v26 = vpack.c.bf16 %v2292_v25, %v2288_v4 }
 0xa7a   : > { %2592 = vmatprep.mubr.bf16.mxu1 %v2294_v8 }
 0xa7b   : > { %2633 = vmatprep.mubr.bf16.mxu0 %v2296_v26  ;;  %2593 = vmatmul.mubr.bf16.vlgmr.msra.gmra.mxu1 %v2293_v9 }
 0xa7c   : > { %2634 = vmatmul.mubr.bf16.vlgmr.msra.gmra.mxu0 %v2295_v51 }
 0xb3b   : > { %v3487_v46 = vpop.f32.mrf.mxu1 }
 0xb3c   : > { %v3509_v5 = vpop.f32.mrf.mxu0 }
 0xb3d   : > { %v3488_v10 = vpop.f32.mrf.mxu1 }
 0xb3e   : > { %v3489_v40 = vadd.f32 %v3488_v10, %v3487_v46  ;;  %v3510_v11 = vpop.f32.mrf.mxu0 }
 0xb3f   : > { %v3490_v52 = vpop.f32.mrf.mxu1  ;;  %v3511_v1 = vadd.f32 %v3510_v11, %v3509_v5 }
 0xb40   : > { %v2595_v12 = vadd.f32 %v3489_v40, %v3375_v45  ;;  %v3512_v13 = vpop.f32.mrf.mxu0 }
 0xb41   : > { %v3491_v41 = vpop.f32.mrf.mxu1 }
 0xb42   : > { %v2636_v7 = vadd.f32 %v3511_v1, %v2595_v12  ;;  %v3492_v14 = vadd.f32 %v3491_v41, %v3490_v52  ;;  %v3513_v15 = vpop.f32.mrf.mxu0 }
 0xb43   : > { %v3514_v17 = vadd.f32 %v3513_v15, %v3512_v13 }
 0xb44   : > { %v2598_v16 = vadd.f32 %v3492_v14, %v3375_v45  ;;  %v2642_v18 = vadd.f32 %v2636_v7, %v5209_v60 }
 0xb46   : > { %v2639_v19 = vadd.f32 %v3514_v17, %v2598_v16  ;;  %2646 = vadd.xlane.f32.xlu1 %v2642_v18 }
 0xb48   : > { %v2643_v20 = vadd.f32 %v2639_v19, %v5211_v61 }
 0xb4a   : > { %2648 = vadd.xlane.f32.xlu0 %v2643_v20 }
 0xbcf   : > { %v2647_v21 = vpop.xlane.xlu1 %2646 }
 0xbd0   : > { %v2650_v22 = vmul.f32 0.0078125, %v2647_v21 }
 0xbd2   : > { %v2652_v23 = vsub.f32 %v2642_v18, %v2650_v22 }
 0xbd3   : > { %v2649_v57 = vpop.xlane.xlu0 %2648 }
 0xbd4   : > { %v2651_v24 = vmul.f32 0.0078125, %v2649_v57  ;;  %v2654_v27 = vmul.f32 %v2652_v23, %v2652_v23 }
 0xbd6   : > { %v2653_v28 = vsub.f32 %v2643_v20, %v2651_v24  ;;  %2656 = vadd.xlane.f32.xlu1 %v2654_v27 }
 0xbd8   : > { %v2655_v29 = vmul.f32 %v2653_v28, %v2653_v28 }
 0xbda   : > { %2658 = vadd.xlane.f32.xlu0 %v2655_v29 }
 0xc5f   : > { %v2657_v30 = vpop.xlane.xlu1 %2656 }
 0xc60   : > { %v2660_v31 = vmul.f32 0.0078125, %v2657_v30 }
 0xc62   : > { %v2662_v60 = vadd.f32 1e-12, %v2660_v31 }
 0xc63   : > { %v2659_v34 = vpop.xlane.xlu0 %2658 }
 0xc64   : > { %4006 = vrsqrt.f32 %v2662_v60  ;;  %v2661_v35 = vmul.f32 0.0078125, %v2659_v34 }
 0xc66   : > { %v2663_v61 = vadd.f32 1e-12, %v2661_v35 }
 0xc68   : > { %4008 = vrsqrt.f32 %v2663_v61 }
 0xc71   : > { %v4007_v36 = vpop.eup %4006 }
 0xc72   : > { %v2666_v39 = vmul.f32 %v4007_v36, %v2652_v23 }
 0xc74   : > { %v2674_v43 = vmul.f32 %v3408_v38, %v2666_v39 }
 0xc75   : > { %v4009_v44 = vpop.eup %4008 }
 0xc76   : > { %v2682_v37 = vadd.f32 %v3409_v42, %v2674_v43  ;;  %v2667_v32 = vmul.f32 %v4009_v44, %v2653_v28 }
 0xc78   : > { %2684 = vst [vmem:[#allocation2] sm:$0xff] %v2682_v37  ;;  %v2675_v33 = vmul.f32 %v3408_v38, %v2667_v32  ;;  %2689 = sbr.rel (%p3410_p10) target bundleno = 3640 (0xe38), region = 148 }
 0xc7a   : > { %v2683_v47 = vadd.f32 %v3409_v42, %v2675_v33 }
 0xc7c   : > { %2685 = vst [vmem:[#allocation2 + $0x8] sm:$0xff] %v2683_v47 }
 0xc7d   : > { %v4010_v48 = vld [vmem:[#allocation20 + $0x38] sm:$0xff]   ;;  %v4530_v49 = vmov 0.0   ;;  %v4011_v50 = vld [vmem:[#allocation20 + $0x30] sm:$0xff]   ;;  %vm4531_vm4 = vmmov 0   ;;  %v4012_v53 = vld [vmem:[#allocation20 + $0x28] sm:$0xff]   ;;  %v2691_v63 = vpack.c.bf16 %v2683_v47, %v2683_v47  ;;  %v2690_v2 = vpack.c.bf16 %v2682_v37, %v2682_v37 }
 0xc7e   : > { %3621 = vmatprep.subr.bf16.mxu0 %v4530_v49  ;;  %3641 = vmatprep.subr.bf16.mxu1 %v4530_v49  ;;  %v4018_v54 = vld [vmem:[#allocation21 + $0x38] sm:$0xff]   ;;  %v4013_v55 = vld [vmem:[#allocation20 + $0x20] sm:$0xff]   ;;  %v4019_v58 = vld [vmem:[#allocation21 + $0x30] sm:$0xff]   ;;  %vm2720_vm5 = vcmask 1041409  }
 0xc7f   : > { %3622 = vmatpush3.bf16.msra.mxu0 %v4010_v48  ;;  %3637 = vmatprep.mubr.msk.bf16.mxu0 %vm4531_vm4, %v4530_v49  ;;  %v4014_v59 = vld [vmem:[#allocation20 + $0x18] sm:$0xff]   ;;  %v4020_v56 = vld [vmem:[#allocation21 + $0x28] sm:$0xff]   ;;  %v4015_v0 = vld [vmem:[#allocation20 + $0x10] sm:$0xff]   ;;  %v2718_v62 = vunpack.c.l.b16 %v2691_v63  ;;  %v2717_v4 = vunpack.c.l.b16 %v2690_v2 }
 0xc80   : > { %3623 = vmatprep.subr.bf16.mxu0 %v4530_v49  ;;  %3657 = vmatprep.mubr.msk.bf16.mxu1 %vm4531_vm4, %v4530_v49  ;;  %v4016_v3 = vld [vmem:[#allocation20 + $0x8] sm:$0xff]   ;;  %v4017_v6 = vld [vmem:[#allocation20] sm:$0xff]   ;;  %v4022_v51 = vld [vmem:[#allocation21 + $0x18] sm:$0xff]  }
 0xc81   : > { %3642 = vmatpush3.bf16.msra.mxu1 %v4018_v54  ;;  %v2719_v25 = vrot.slane %v2718_v62, 7  ;;  %v4021_v9 = vld [vmem:[#allocation21 + $0x20] sm:$0xff]   ;;  %v4023_v46 = vld [vmem:[#allocation21 + $0x10] sm:$0xff]   ;;  %v4024_v5 = vld [vmem:[#allocation21 + $0x8] sm:$0xff]  }
 0xc82   : > { %3643 = vmatprep.subr.bf16.mxu1 %v4530_v49  ;;  %v4025_v45 = vld [vmem:[#allocation21] sm:$0xff]   ;;  %v3411_v10 = vld [vmem:[%s5526_s2] ss:$0 sm:$0xff] }
 0xc83   : > { %3624 = vmatpush3.bf16.msra.mxu0 %v4011_v50  ;;  %v2721_v8 = vsel %vm2720_vm5, %v2719_v25, %v2717_v4  ;;  %v3420_v7 = vld [vmem:[%s5527_s30] ss:$0 sm:$0xff] }
 0xc84   : > { %3625 = vmatprep.subr.bf16.mxu0 %v4530_v49  ;;  %v2722_v26 = vpack.c.b16 %v2721_v8, %v2721_v8 }
 0xc85   : > { %3644 = vmatpush3.bf16.msra.mxu1 %v4019_v58 }
 0xc86   : > { %3645 = vmatprep.subr.bf16.mxu1 %v4530_v49 }
 0xc87   : > { %3626 = vmatpush3.bf16.msra.mxu0 %v4012_v53 }
 0xc88   : > { %3627 = vmatprep.subr.bf16.mxu0 %v4530_v49 }
 0xc89   : > { %3646 = vmatpush3.bf16.msra.mxu1 %v4020_v56 }
 0xc8a   : > { %3647 = vmatprep.subr.bf16.mxu1 %v4530_v49 }
 0xc8b   : > { %3628 = vmatpush3.bf16.msra.mxu0 %v4013_v55 }
 0xc8c   : > { %3629 = vmatprep.subr.bf16.mxu0 %v4530_v49 }
 0xc8d   : > { %3648 = vmatpush3.bf16.msra.mxu1 %v4021_v9 }
 0xc8e   : > { %3649 = vmatprep.subr.bf16.mxu1 %v4530_v49 }
 0xc8f   : > { %3630 = vmatpush3.bf16.msra.mxu0 %v4014_v59 }
 0xc90   : > { %3631 = vmatprep.subr.bf16.mxu0 %v4530_v49 }
 0xc91   : > { %3650 = vmatpush3.bf16.msra.mxu1 %v4022_v51 }
 0xc92   : > { %3651 = vmatprep.subr.bf16.mxu1 %v4530_v49 }
 0xc93   : > { %3632 = vmatpush3.bf16.msra.mxu0 %v4015_v0 }
 0xc94   : > { %3633 = vmatprep.subr.bf16.mxu0 %v4530_v49 }
 0xc95   : > { %3652 = vmatpush3.bf16.msra.mxu1 %v4023_v46 }
 0xc96   : > { %3653 = vmatprep.subr.bf16.mxu1 %v4530_v49 }
 0xc97   : > { %3634 = vmatpush3.bf16.msra.mxu0 %v4016_v3 }
 0xc98   : > { %3635 = vmatprep.subr.bf16.mxu0 %v4530_v49 }
 0xc99   : > { %3654 = vmatpush3.bf16.msra.mxu1 %v4024_v5 }
 0xc9a   : > { %3655 = vmatprep.subr.bf16.mxu1 %v4530_v49 }
 0xc9b   : > { %3636 = vmatpush3.bf16.msra.mxu0 %v4017_v6 }
 0xc9d   : > { %3656 = vmatpush3.bf16.msra.mxu1 %v4025_v45 }
 0xc9e   : > { %3638 = vmatmul.mubr.bf16.vlgmr.msra.gmra.mxu0 %v2722_v26 }
 0xd5e   : > { %v2806_v40 = vpop.f32.mrf.mxu0 }
 0xd5f   : > { %v2807_v11 = vadd.f32 %v3411_v10, %v2806_v40 }
 0xd60   : > { %v3639_v52 = vpop.f32.mrf.mxu0 }
 0xd61   : > { %4026 = vtanh.f32 %v2807_v11 }
 0xd62   : > { %v2809_v12 = vpop.f32.mrf.mxu0 }
 0xd64   : > { %v3640_v1 = vpop.f32.mrf.mxu0 }
 0xd6e   : > { %v4027_v13 = vpop.eup %4026 }
 0xd6f   : > { %v2813_v41 = vpack.c.bf16 %v4027_v13, %v4027_v13 }
 0xd71   : > { %3658 = vmatmul.mubr.bf16.vlgmr.msra.gmra.mxu1 %v2813_v41 }
 0xe31   : > { %v2919_v14 = vpop.f32.mrf.mxu1 }
 0xe32   : > { %v2920_v15 = vadd.f32 %v3420_v7, %v2919_v14 }
 0xe33   : > { %v3659_v16 = vpop.f32.mrf.mxu1 }
 0xe34   : > { %v2925_v17 = vmax.f32 %v2920_v15, 0.0 }
 0xe35   : > { %v2922_v18 = vpop.f32.mrf.mxu1 }
 0xe36   : > { %2926 = vst [vmem:[%s1004_s19] sm:$0x3] %v2925_v17 }
 0xe37   : > { %v3660_v19 = vpop.f32.mrf.mxu1 }
 0xe38 PF: > { %s5528_s25 = sld [smem:[#allocation38_spill]]  ;;  %s2941_s17 = sshll.u32 %s1004_s19, 4  ;;  %s2942_s17 = int_to_ptr.vmem [resolvable:$true] %s2941_s17 }
 0xe39   : > { %s5529_s20 = sld [smem:[#allocation34_spill]]  ;;  %s4360_s6 = scalar_lea.vmem %s2942_s17, 32 }
 0xe3a   : > { %s5530_s1 = sld [smem:[#allocation44_spill]]  ;;  %p4361_p9 = scmp.ne.s32.totalorder %s2942_s17, %s4360_s6 }
 0xe3b   : > { %s5531_s15 = sld [smem:[#allocation68_spill]]  ;;  %s4532_s9 = smov [#allocation23]  }
 0xe3c   : > { %s4364_s4 = sshll.u32 %s4532_s9, 4  ;;  %s4365_s4 = int_to_ptr.vmem [resolvable:$false] %s4364_s4 }
 0xe3d   : > { %s4366_s11 = scalar_lea.vmem %s4365_s4, 64  ;;  %p4367_p8 = scmp.lt.s32.totalorder %s2942_s17, %s4365_s4 }
 0xe3e   : > { %s3430_s3 = sshll.u32 %s5528_s25, 5  ;;  %p4368_p1 = scmp.lt.s32.totalorder %s4366_s11, %s4360_s6 }
 0xe3f   : > { %s5532_s12 = sand.u32 1, %s5529_s20  }
 0xe40   : > { %s2928_s0 = scalar_lea.sflag [#allocation5], %s5532_s12  ;;  %p5533_p11 = scmp.ne.s32.totalorder %s5530_s1, 0 }
 0xe41   : > { %s2939_s18 = scalar_lea.hbm %s5531_s15, %s3430_s3  ;;  %p4369_p0 = por %p4368_p1, %p4367_p8 }
 0xe42   : > { %p4362_p13 = pnand %p4361_p9, %p5533_p11 }
 0xe44   : > { %p4363_p12 = pneg %p4362_p13 }
 0xe46   : > { %p4370_p7 = pnand %p4369_p0, %p4363_p12 }
 0xe48   : > { %4373 = shalt.err (!%p4370_p7)
}
 0xe49   : > { %s4374_s22 = scalar_lea.hbm %s2939_s18, 32  ;;  %s4378_s7 = scalar_lea.hbm %s5531_s15, 64 }
 0xe4a   : > { %p4375_p2 = scmp.ne.s32.totalorder %s2939_s18, %s4374_s22  ;;  %p4379_p5 = scmp.lt.s32.totalorder %s2939_s18, %s5531_s15 }
 0xe4b   : > { %p4380_p4 = scmp.lt.s32.totalorder %s4378_s7, %s4374_s22 }
 0xe4c   : > { %p4376_p3 = pnand %p4375_p2, %p5533_p11 }
 0xe4d   : > { %p4381_p10 = por %p4380_p4, %p4379_p5 }
 0xe4e   : > { %p4377_p6 = pneg %p4376_p3 }
 0xe50   : > { %p4382_p9 = pnand %p4381_p10, %p4377_p6 }
 0xe52   : > { %4385 = shalt.err (!%p4382_p9)
}
 0xe53   : > { %3695 = dma.vmem_to_hbm [thread:$0]  (%p5533_p11), %s2942_s17, 32, %s2939_s18, %s2928_s0  }
 0xe54 PF: > { %s5534_s14 = sld [smem:[#allocation41_spill]] }
 0xe55   : > { %s5535_s16 = sld [smem:[#allocation33_spill]] }
 0xe56   : > { %s5536_s21 = sld [smem:[#allocation45_spill]] }
 0xe5a   : > { %p3744_p13 = scmp.ge.s32.totalorder %s5534_s14, 2 }
 0xe5b   : > { %s2953_s23 = sand.u32 1, %s5535_s16  }
 0xe5c   : > { %p5537_p12 = scmp.ne.s32.totalorder %s5536_s21, 0  ;;  %s2954_s2 = scalar_lea.sflag [#allocation5], %s2953_s23 }
 0xe5e   : > { %p3736_p8 = pnand %p3744_p13, %p5537_p12 }
 0xe60   : > { %p3737_p1 = pneg %p3736_p8 }
 0xe62   : > { %4463 = dma.done.wait (%p3737_p1), %s2954_s2, 32  }
 0xe63   : > { %4465 = vsyncadd (%p3737_p1), %s2954_s2, 4294967264  ;;  %s50_s2 = sadd.s32 1, %s5534_s14   ;;  %s5538_s27 = sld [smem:[#allocation34_spill]] }
 0xe64   : > { %p47_p0 = scmp.ge.s32.totalorder %s50_s2, 6   ;;  %s5539_s30 = sld [smem:[#allocation35_spill]] }
 0xe65   : > { %s5540_s0 = sld [smem:[#allocation36_spill]]  ;;  %s5546_s28 = smov %s4476_s29 }
 0xe66   : > { %s5541_s19 = sld [smem:[#allocation49_spill]]  ;;  %s5547_s29 = smov %s4798_s8 }
 0xe67   : > { %s5542_s1 = sld [smem:[#allocation39_spill]]  ;;  %49 = sbr.rel (!%p47_p0) target bundleno = 40 (0x28), region = 274 }
 0xe68   : > { %s5543_s20 = sld [smem:[#allocation40_spill]] }
 0xe69   : > { %s5544_s21 = sld [smem:[#allocation47_spill]] }
 0xe6a   : > { %s5545_s22 = sld [smem:[#allocation48_spill]] }
 0xe6c   :  { %2959 = vsyncpa [#allocation4], 1 }
 0xe6d   :  { %2961 = vsyncpa [#allocation4 + $0x1], 1 }
 0xe6e   :  { %2962 = vsyncpa [#allocation7], 1 }
 0xe6f   :  { %2964 = vsyncpa [#allocation7 + $0x1], 1 }
 0xe70   :  { %2965 = vsyncpa [#allocation10], 1 }
 0xe71   :  { %2967 = vsyncpa [#allocation10 + $0x1], 1 }
 0xe72   :  { %2968 = vsyncpa [#allocation13], 1 }
 0xe73   :  { %2970 = vsyncpa [#allocation13 + $0x1], 1 }
 0xe74   :  { %2971 = vsyncpa [#allocation16], 1 }
 0xe75   :  { %2973 = vsyncpa [#allocation16 + $0x1], 1 }
 0xe76   :  { %2974 = vsyncpa [#allocation19], 1 }
 0xe77   :  { %2976 = vsyncpa [#allocation19 + $0x1], 1 }
 0xe78   :  { %2977 = vsyncpa [#allocation22], 1 }
 0xe79   :  { %2978 = vsyncpa [#allocation5], 1 }
 0xe7a   :  { %2980 = vsyncpa [#allocation5 + $0x1], 1 }

</bundles_post_ra>
